<compile_context>
chip_gen: v7x
topology: tpu7x:2x2x1
jax: 0.10.0
libtpu: 0.0.40
codegen_flags: <defaults>
</compile_context>

<pallas_src>
import functools
import itertools

import numpy as np
import jax
import jax.numpy as jnp
from jax.experimental import pallas as pl
from jax.experimental.pallas import tpu as pltpu


def _hardswish(x):
    # torch.nn.Hardswish: x * relu6(x + 3) / 6
    return x * jnp.clip(x + 3.0, 0.0, 6.0) * (1.0 / 6.0)


# --------------------------------------------------------------------------- #
# Kernel
# --------------------------------------------------------------------------- #
def _attention_kernel(x_ref, wqkv_ref, bqkv_ref, ab_ref, wproj_ref, bproj_ref,
                      o_ref, acc_ref, *, num_heads, key_dim, d, flat_scores):
    # x_ref     : (TB, N, C)  f32
    # wqkv_ref  : (C, H*ph)   bf16 (scale folded into q columns)
    # bqkv_ref  : (1, H*ph)   f32  (scale folded into q part)
    # ab_ref    : (H, M, M)   f32 block-diag bias+mask   (flat_scores)
    #             (H, N, N)   f32 per-head bias          (batched path)
    # wproj_ref : (H, d, dim) bf16
    # bproj_ref : (1, dim)    f32
    # o_ref     : (TB, N, dim)
    # acc_ref   : (M, dim)    f32 VMEM scratch accumulator
    TB, N, C = x_ref.shape
    dim = o_ref.shape[-1]
    M = TB * N
    per_head = 2 * key_dim + d

    # One big activation slab (leading-axes merge: layout-preserving, no relayout).
    x = x_ref[...].reshape(M, C).astype(jnp.bfloat16)

    # Single fused QKV projection: MXU N-dim = H*(2*kd+d) instead of 8/16-wide
    # per-head passes; f32 accumulation; bias (with folded scale) added once.
    qkv = jnp.dot(x, wqkv_ref[...],
                  preferred_element_type=jnp.float32) + bqkv_ref[...]

    acc_ref[...] = jnp.zeros_like(acc_ref)

    # Static head loop (H is small): per-head q/k/v are *static* lane slices of
    # the fused qkv result; each head's contribution is retired into the VMEM
    # accumulator immediately, bounding live ranges across the unrolled heads.
    for h in range(num_heads):
        off = h * per_head
        q = qkv[:, off:off + key_dim].astype(jnp.bfloat16)
        k = qkv[:, off + key_dim:off + 2 * key_dim].astype(jnp.bfloat16)
        v = qkv[:, off + 2 * key_dim:off + per_head].astype(jnp.bfloat16)

        if flat_scores:
            # Dense (M, kd) @ (kd, M) scores on the wide MXU; cross-batch blocks
            # are buried under the -1e9 entries baked into ab_ref, so softmax
            # zeroes them exactly and P @ V stays block-diagonal-correct.
            s = jnp.einsum('nd,md->nm', q, k,
                           preferred_element_type=jnp.float32)
            s = s + ab_ref[h]
            s = s - jnp.max(s, axis=-1, keepdims=True)
            p = jnp.exp(s)
            p = p * pl.reciprocal(jnp.sum(p, axis=-1, keepdims=True),
                                  approx=True)
            o_h = jnp.dot(p.astype(jnp.bfloat16), v,
                          preferred_element_type=jnp.float32)          # (M, d)
        else:
            q3 = q.reshape(TB, N, key_dim)
            k3 = k.reshape(TB, N, key_dim)
            v3 = v.reshape(TB, N, d)
            s = jnp.einsum('bnd,bmd->bnm', q3, k3,
                           preferred_element_type=jnp.float32)
            s = s + ab_ref[h][None, :, :]
            s = s - jnp.max(s, axis=-1, keepdims=True)
            p = jnp.exp(s)
            p = p * pl.reciprocal(jnp.sum(p, axis=-1, keepdims=True),
                                  approx=True)
            o_h = jnp.einsum('bnm,bmd->bnd', p.astype(jnp.bfloat16), v3,
                             preferred_element_type=jnp.float32).reshape(M, d)

        hs = _hardswish(o_h).astype(jnp.bfloat16)
        acc_ref[...] += jnp.dot(hs, wproj_ref[h],
                                preferred_element_type=jnp.float32)

    y = acc_ref[...] + bproj_ref[...]
    o_ref[...] = y.reshape(TB, N, dim).astype(o_ref.dtype)


# --------------------------------------------------------------------------- #
# Generation-aware VMEM / batch-block heuristics
# --------------------------------------------------------------------------- #
def _tpu_memory_model():
    """Return (vmem_capacity_bytes, num_tensorcores) with safe fallbacks."""
    try:
        info = pltpu.get_tpu_info()
        vmem_cap = int(info.vmem_capacity_bytes)
        cores = 0
        for attr in ("num_cores", "core_count", "num_tensorcores"):
            v = getattr(info, attr, None)
            if v:
                cores = int(v)
                break
        if cores <= 0:
            # v7x-class parts (64 MiB VMEM per TC) have 2 TensorCores per chip.
            cores = 2 if vmem_cap <= 64 * 1024 * 1024 else 1
        return vmem_cap, cores
    except Exception:
        # Conservative fallback (v7x per-TC VMEM size), single core.
        return 64 * 1024 * 1024, 1


def _pick_tb(B, N, C, dim, num_heads, key_dim, d, *,
             budget_bytes, num_cores, flat_limit=256):
    """Largest batch block (divisor of B) fitting the VMEM budget, while keeping
    >= 2 grid steps per TensorCore on multi-core (v7x) chips."""
    h_all = num_heads * (2 * key_dim + d)
    # Resident operands (x2 pipeline buffers): wqkv bf16, bqkv, wproj bf16, bproj.
    resident = 2 * (2 * C * h_all + 4 * h_all + 2 * num_heads * d * dim + 4 * dim)

    def cost(tb):
        M = tb * N
        flat = M <= flat_limit
        n_cols = M if flat else N
        ab_rows = M if flat else N
        blocks = 2 * 4 * tb * N * (C + dim)            # x / out tiles, double-buffered
        ab_bytes = 2 * 4 * num_heads * ab_rows * n_cols  # resident attention bias (x2)
        qkv = (4 + 2) * M * h_all                      # f32 fused qkv + bf16 mirrors
        scores = 2 * 4 * M * n_cols                    # s + p (one head live at a time)
        head_io = 2 * M * (2 * key_dim + 2 * d)        # bf16 q/k/v/o for the live head
        acc = 4 * M * dim                              # VMEM scratch accumulator
        return resident + blocks + ab_bytes + qkv + scores + head_io + acc

    divisors = [t for t in range(B, 0, -1) if B % t == 0]
    # >= 2 steps per TensorCore on 2-TC chips (v7x); single-TC parts maximize TB.
    min_steps = min(B, 2 * num_cores) if num_cores >= 2 else 1
    preferred = [t for t in divisors
                 if (B // t) >= min_steps and cost(t) <= budget_bytes]
    if preferred:
        return preferred[0]
    fitting = [t for t in divisors if cost(t) <= budget_bytes]
    return fitting[0] if fitting else 1


# --------------------------------------------------------------------------- #
# Parameter packing (done ONCE at model init, not per forward call)
# --------------------------------------------------------------------------- #
def pack_attention_params(wqkv, bqkv, attention_biases, bias_idxs, wproj, bproj,
                          *, num_heads, key_dim, attn_ratio):
    d = int(attn_ratio * key_dim)
    per_head = 2 * key_dim + d
    C = wqkv.shape[0]
    dim = wproj.shape[1]
    scale = key_dim ** (-0.5)

    # Fold the attention scale into the q columns of the fused qkv weight/bias.
    col_scale = np.ones((num_heads, per_head), dtype=np.float32)
    col_scale[:, :key_dim] = scale
    col_scale = jnp.asarray(col_scale.reshape(1, num_heads * per_head))

    return dict(
        wqkv=(wqkv * col_scale).astype(jnp.bfloat16),               # (C, H*ph)
        bqkv=(bqkv.reshape(1, -1) * col_scale).astype(jnp.float32),  # (1, H*ph)
        wproj=wproj.reshape(num_heads, d, dim).astype(jnp.bfloat16),  # (H, d, dim)
        bproj=bproj.reshape(1, dim).astype(jnp.float32),             # (1, dim)
        ab=attention_biases[:, bias_idxs].astype(jnp.float32),       # (H, N, N)
        num_heads=num_heads, key_dim=key_dim, d=d, dim=dim, C=C,
    )


# --------------------------------------------------------------------------- #
# Forward
# --------------------------------------------------------------------------- #
def attention_forward(x, params):
    B, N, C = x.shape
    num_heads = params["num_heads"]
    key_dim = params["key_dim"]
    d = params["d"]
    dim = params["dim"]
    h_all = num_heads * (2 * key_dim + d)

    vmem_cap, num_cores = _tpu_memory_model()
    # Leave headroom below the physical ceiling (v7x: ~48 MiB, v5e/v6e: ~96 MiB).
    vmem_limit = int(max(32 * 1024 * 1024,
                         min(96 * 1024 * 1024, (vmem_cap * 3) // 4)))
    budget = vmem_limit - 4 * 1024 * 1024   # headroom for Pallas internal scratch

    TB = _pick_tb(B, N, C, dim, num_heads, key_dim, d,
                  budget_bytes=budget, num_cores=num_cores)
    M = TB * N
    flat_scores = M <= 256   # dense (M,M) scores only while they stay small

    ab = params["ab"]
    if flat_scores:
        # Block-diagonal bias: tile ab over (TB, TB) blocks; cross-batch blocks
        # get -1e9 so softmax kills them exactly.
        # TODO(synk): cache this per static batch size at model init.
        rb = jnp.arange(M, dtype=jnp.int32) // N
        same = (rb[:, None] == rb[None, :])
        ab_arg = jnp.where(same[None], jnp.tile(ab, (1, TB, TB)),
                           jnp.float32(-1e9))
        ab_spec = pl.BlockSpec((num_heads, M, M), lambda b: (0, 0, 0))
    else:
        ab_arg = ab
        ab_spec = pl.BlockSpec((num_heads, N, N), lambda b: (0, 0, 0))

    kernel = functools.partial(_attention_kernel, num_heads=num_heads,
                               key_dim=key_dim, d=d, flat_scores=flat_scores)

    return pl.pallas_call(
        kernel,
        out_shape=jax.ShapeDtypeStruct((B, N, dim), x.dtype),
        grid_spec=pltpu.PrefetchScalarGridSpec(
            num_scalar_prefetch=0,
            grid=(B // TB,),
            in_specs=[
                pl.BlockSpec((TB, N, C), lambda b: (b, 0, 0)),
                pl.BlockSpec((C, h_all), lambda b: (0, 0)),
                pl.BlockSpec((1, h_all), lambda b: (0, 0)),
                ab_spec,
                pl.BlockSpec((num_heads, d, dim), lambda b: (0, 0, 0)),
                pl.BlockSpec((1, dim), lambda b: (0, 0)),
            ],
            out_specs=pl.BlockSpec((TB, N, dim), lambda b: (b, 0, 0)),
            scratch_shapes=[pltpu.VMEM((M, dim), jnp.float32)],
        ),
        compiler_params=pltpu.CompilerParams(
            dimension_semantics=("parallel",),
            vmem_limit_bytes=vmem_limit,
        ),
    )(x, params["wqkv"], params["bqkv"], ab_arg, params["wproj"],
      params["bproj"])


# --------------------------------------------------------------------------- #
# Pure-JAX reference + bias-index construction (mirrors the PyTorch module)
# --------------------------------------------------------------------------- #
def _reference_forward(x, wqkv, bqkv, ab, wproj, bproj,
                       *, num_heads, key_dim, attn_ratio):
    B, N, C = x.shape
    d = int(attn_ratio * key_dim)
    scale = key_dim ** (-0.5)
    qkv = x @ wqkv + bqkv
    qkv = qkv.reshape(B, N, num_heads, 2 * key_dim + d)
    q = qkv[..., :key_dim].transpose(0, 2, 1, 3)
    k = qkv[..., key_dim:2 * key_dim].transpose(0, 2, 1, 3)
    v = qkv[..., 2 * key_dim:].transpose(0, 2, 1, 3)
    attn = jnp.einsum('bhnd,bhmd->bhnm', q, k) * scale + ab[None]
    attn = jax.nn.softmax(attn, axis=-1)
    o = jnp.einsum('bhnm,bhmd->bhnd', attn, v)
    o = o.transpose(0, 2, 1, 3).reshape(B, N, num_heads * d)
    o = _hardswish(o)
    return o @ wproj + bproj


def _make_attention_bias_idxs(resolution):
    points = list(itertools.product(range(resolution), range(resolution)))
    N = len(points)
    attention_offsets = {}
    idxs = []
    for p1 in points:
        for p2 in points:
            offset = (abs(p1[0] - p2[0]), abs(p1[1] - p2[1]))
            if offset not in attention_offsets:
                attention_offsets[offset] = len(attention_offsets)
            idxs.append(attention_offsets[offset])
    return np.array(idxs, dtype=np.int32).reshape(N, N), len(attention_offsets)


if __name__ == "__main__":
    # small, forward-consistent shapes
    B = 8
    resolution = 4
    N = resolution * resolution        # 16 tokens
    dim = 32                           # C
    key_dim = 8
    num_heads = 2
    attn_ratio = 2
    d = int(attn_ratio * key_dim)      # 16
    dh = d * num_heads                 # 32
    h = dh + 2 * key_dim * num_heads   # 64

    key = jax.random.PRNGKey(0)
    k_x, k_wqkv, k_bqkv, k_bias, k_wproj, k_bproj = jax.random.split(key, 6)

    x = jax.random.normal(k_x, (B, N, dim), dtype=jnp.float32)

    # deterministic synthetic parameters (Linear + eval-mode BatchNorm1d folded)
    wqkv = jax.random.normal(k_wqkv, (dim, h), dtype=jnp.float32) * 0.2
    bqkv = jax.random.normal(k_bqkv, (1, h), dtype=jnp.float32) * 0.05
    wproj = jax.random.normal(k_wproj, (dh, dim), dtype=jnp.float32) * 0.2
    bproj = jax.random.normal(k_bproj, (1, dim), dtype=jnp.float32) * 0.1

    # attention biases: parameter (num_heads, n_offsets) gathered by bias idxs
    idxs_np, n_offsets = _make_attention_bias_idxs(resolution)
    attention_biases = jax.random.normal(
        k_bias, (num_heads, n_offsets), dtype=jnp.float32) * 0.5
    bias_idxs = jnp.asarray(idxs_np)
    ab = attention_biases[:, bias_idxs]           # (num_heads, N, N)

    # pack once at "model init" (scale fold, bf16 casts, bias gather)
    params = pack_attention_params(wqkv, bqkv, attention_biases, bias_idxs,
                                   wproj, bproj, num_heads=num_heads,
                                   key_dim=key_dim, attn_ratio=attn_ratio)

    out = attention_forward(x, params)
    out = jax.block_until_ready(out)

    ref = _reference_forward(x, wqkv, bqkv, ab, wproj, bproj,
                             num_heads=num_heads, key_dim=key_dim,
                             attn_ratio=attn_ratio)
    # bf16 MXU operands + approx reciprocal -> looser tolerance than f32 ref
    np.testing.assert_allclose(np.asarray(out), np.asarray(ref),
                               rtol=3e-2, atol=3e-2)

    print("KERNEL_OK")
</pallas_src>

<mosaic_0001>
module attributes {stable_mosaic.version = 11 : i64} {
  func.func @_attention_kernel(%arg0: i32, %arg1: memref<8x16x32xf32, #tpu.memory_space<vmem>>, %arg2: memref<32x64xbf16, #tpu.memory_space<vmem>>, %arg3: memref<1x64xf32, #tpu.memory_space<vmem>>, %arg4: memref<2x128x128xf32, #tpu.memory_space<vmem>>, %arg5: memref<2x16x32xbf16, #tpu.memory_space<vmem>>, %arg6: memref<1x32xf32, #tpu.memory_space<vmem>>, %arg7: memref<8x16x32xf32, #tpu.memory_space<vmem>>, %arg8: memref<128x32xf32, #tpu.memory_space<vmem>>) attributes {dimension_semantics = [#tpu.dimension_semantics<parallel>], iteration_bounds = array<i64: 1>, scalar_prefetch = 0 : i64, scratch_operands = 1 : i64, tpu.core_type = #tpu.core_type<tc>, window_params = [{transform_indices = @transform_0, window_bounds = array<i64: 8, 16, 32>}, {pipeline_mode = #tpu.pipeline_mode<synchronous>, transform_indices = @transform_1, window_bounds = array<i64: 32, 64>}, {pipeline_mode = #tpu.pipeline_mode<synchronous>, transform_indices = @transform_2, window_bounds = array<i64: 1, 64>}, {pipeline_mode = #tpu.pipeline_mode<synchronous>, transform_indices = @transform_3, window_bounds = array<i64: 2, 128, 128>}, {pipeline_mode = #tpu.pipeline_mode<synchronous>, transform_indices = @transform_4, window_bounds = array<i64: 2, 16, 32>}, {pipeline_mode = #tpu.pipeline_mode<synchronous>, transform_indices = @transform_5, window_bounds = array<i64: 1, 32>}, {transform_indices = @transform_6, window_bounds = array<i64: 8, 16, 32>}]} {
    %c0 = arith.constant 0 : index
    %c0_0 = arith.constant 0 : index
    %c0_1 = arith.constant 0 : index
    %0 = vector.load %arg1[%c0, %c0_0, %c0_1] : memref<8x16x32xf32, #tpu.memory_space<vmem>>, vector<8x16x32xf32>
    %1 = vector.shape_cast %0 : vector<8x16x32xf32> to vector<128x32xf32>
    %2 = arith.truncf %1 : vector<128x32xf32> to vector<128x32xbf16>
    %c0_2 = arith.constant 0 : index
    %c0_3 = arith.constant 0 : index
    %3 = vector.load %arg2[%c0_2, %c0_3] : memref<32x64xbf16, #tpu.memory_space<vmem>>, vector<32x64xbf16>
    %cst = arith.constant dense<0.000000e+00> : vector<128x64xf32>
    %4 = tpu.matmul %2, %3, %cst {dimension_numbers = #tpu.dot_dimension_numbers<[1], [0], [0], [1], [0, 0, 1, 1], [], []>} : vector<128x32xbf16>, vector<32x64xbf16>, vector<128x64xf32> -> vector<128x64xf32>
    %c0_4 = arith.constant 0 : index
    %c0_5 = arith.constant 0 : index
    %5 = vector.load %arg3[%c0_4, %c0_5] : memref<1x64xf32, #tpu.memory_space<vmem>>, vector<1x64xf32>
    %6 = vector.broadcast %5 : vector<1x64xf32> to vector<128x64xf32>
    %7 = arith.addf %4, %6 : vector<128x64xf32>
    %cst_6 = arith.constant 0.000000e+00 : f32
    %8 = vector.broadcast %cst_6 : f32 to vector<128x32xf32>
    %c0_7 = arith.constant 0 : index
    %c0_8 = arith.constant 0 : index
    %9 = vector.load %arg8[%c0_7, %c0_8] : memref<128x32xf32, #tpu.memory_space<vmem>>, vector<128x32xf32>
    tpu.vector_store %arg8[%c0_7, %c0_8], %8 {strides = array<i32>} : memref<128x32xf32, #tpu.memory_space<vmem>>, vector<128x32xf32>,
    %10 = vector.extract_strided_slice %7 {offsets = [0, 0], sizes = [128, 8], strides = [1, 1]} : vector<128x64xf32> to vector<128x8xf32>
    %11 = arith.truncf %10 : vector<128x8xf32> to vector<128x8xbf16>
    %12 = vector.extract_strided_slice %7 {offsets = [0, 8], sizes = [128, 8], strides = [1, 1]} : vector<128x64xf32> to vector<128x8xf32>
    %13 = arith.truncf %12 : vector<128x8xf32> to vector<128x8xbf16>
    %14 = vector.extract_strided_slice %7 {offsets = [0, 16], sizes = [128, 16], strides = [1, 1]} : vector<128x64xf32> to vector<128x16xf32>
    %15 = arith.truncf %14 : vector<128x16xf32> to vector<128x16xbf16>
    "tpu.trace_start"() <{level = 10 : i32, message = "nd,md->nm"}> : () -> ()
    %cst_9 = arith.constant dense<0.000000e+00> : vector<128x128xf32>
    %16 = tpu.matmul %11, %13, %cst_9 {dimension_numbers = #tpu.dot_dimension_numbers<[1], [1], [0], [0], [0, 0, 1, 0], [], []>} : vector<128x8xbf16>, vector<128x8xbf16>, vector<128x128xf32> -> vector<128x128xf32>
    "tpu.trace_stop"() : () -> ()
    %c0_10 = arith.constant 0 : index
    %c0_11 = arith.constant 0 : index
    %c0_12 = arith.constant 0 : index
    %17 = vector.load %arg4[%c0_10, %c0_11, %c0_12] : memref<2x128x128xf32, #tpu.memory_space<vmem>>, vector<1x128x128xf32>
    %18 = vector.shape_cast %17 : vector<1x128x128xf32> to vector<128x128xf32>
    %19 = arith.addf %16, %18 : vector<128x128xf32>
    %cst_13 = arith.constant dense<0xFF800000> : vector<128xf32>
    %20 = vector.multi_reduction <maximumf>, %19, %cst_13 [1] : vector<128x128xf32> to vector<128xf32>
    %21 = vector.shape_cast %20 : vector<128xf32> to vector<128x1xf32>
    %22 = vector.broadcast %21 : vector<128x1xf32> to vector<128x128xf32>
    %23 = arith.subf %19, %22 : vector<128x128xf32>
    %24 = math.exp %23 : vector<128x128xf32>
    %cst_14 = arith.constant dense<0.000000e+00> : vector<128xf32>
    %25 = vector.multi_reduction <add>, %24, %cst_14 [1] : vector<128x128xf32> to vector<128xf32>
    %26 = vector.shape_cast %25 : vector<128xf32> to vector<128x1xf32>
    %27 = tpu.reciprocal %26 {approx = true} : vector<128x1xf32> -> vector<128x1xf32>
    %28 = vector.broadcast %27 : vector<128x1xf32> to vector<128x128xf32>
    %29 = arith.mulf %24, %28 : vector<128x128xf32>
    %30 = arith.truncf %29 : vector<128x128xf32> to vector<128x128xbf16>
    %cst_15 = arith.constant dense<0.000000e+00> : vector<128x16xf32>
    %31 = tpu.matmul %30, %15, %cst_15 {dimension_numbers = #tpu.dot_dimension_numbers<[1], [0], [0], [1], [0, 0, 1, 1], [], []>} : vector<128x128xbf16>, vector<128x16xbf16>, vector<128x16xf32> -> vector<128x16xf32>
    %cst_16 = arith.constant 3.000000e+00 : f32
    %32 = vector.broadcast %cst_16 : f32 to vector<128x16xf32>
    %33 = arith.addf %31, %32 : vector<128x16xf32>
    %cst_17 = arith.constant 0.000000e+00 : f32
    %cst_18 = arith.constant 6.000000e+00 : f32
    %34 = vector.broadcast %cst_17 : f32 to vector<128x16xf32>
    %35 = arith.maximumf %34, %33 : vector<128x16xf32>
    %36 = vector.broadcast %cst_18 : f32 to vector<128x16xf32>
    %37 = arith.minimumf %36, %35 : vector<128x16xf32>
    %38 = arith.mulf %31, %37 : vector<128x16xf32>
    %cst_19 = arith.constant 0.166666672 : f32
    %39 = vector.broadcast %cst_19 : f32 to vector<128x16xf32>
    %40 = arith.mulf %38, %39 : vector<128x16xf32>
    %41 = arith.truncf %40 : vector<128x16xf32> to vector<128x16xbf16>
    %c0_20 = arith.constant 0 : index
    %c0_21 = arith.constant 0 : index
    %42 = vector.load %arg8[%c0_20, %c0_21] : memref<128x32xf32, #tpu.memory_space<vmem>>, vector<128x32xf32>
    %c0_22 = arith.constant 0 : index
    %c0_23 = arith.constant 0 : index
    %c0_24 = arith.constant 0 : index
    %43 = vector.load %arg5[%c0_22, %c0_23, %c0_24] : memref<2x16x32xbf16, #tpu.memory_space<vmem>>, vector<1x16x32xbf16>
    %44 = vector.shape_cast %43 : vector<1x16x32xbf16> to vector<16x32xbf16>
    %cst_25 = arith.constant dense<0.000000e+00> : vector<128x32xf32>
    %45 = tpu.matmul %41, %44, %cst_25 {dimension_numbers = #tpu.dot_dimension_numbers<[1], [0], [0], [1], [0, 0, 1, 1], [], []>} : vector<128x16xbf16>, vector<16x32xbf16>, vector<128x32xf32> -> vector<128x32xf32>
    %46 = arith.addf %42, %45 : vector<128x32xf32>
    %c0_26 = arith.constant 0 : index
    %c0_27 = arith.constant 0 : index
    %47 = vector.load %arg8[%c0_26, %c0_27] : memref<128x32xf32, #tpu.memory_space<vmem>>, vector<128x32xf32>
    tpu.vector_store %arg8[%c0_26, %c0_27], %46 {strides = array<i32>} : memref<128x32xf32, #tpu.memory_space<vmem>>, vector<128x32xf32>,
    %48 = vector.extract_strided_slice %7 {offsets = [0, 32], sizes = [128, 8], strides = [1, 1]} : vector<128x64xf32> to vector<128x8xf32>
    %49 = arith.truncf %48 : vector<128x8xf32> to vector<128x8xbf16>
    %50 = vector.extract_strided_slice %7 {offsets = [0, 40], sizes = [128, 8], strides = [1, 1]} : vector<128x64xf32> to vector<128x8xf32>
    %51 = arith.truncf %50 : vector<128x8xf32> to vector<128x8xbf16>
    %52 = vector.extract_strided_slice %7 {offsets = [0, 48], sizes = [128, 16], strides = [1, 1]} : vector<128x64xf32> to vector<128x16xf32>
    %53 = arith.truncf %52 : vector<128x16xf32> to vector<128x16xbf16>
    "tpu.trace_start"() <{level = 10 : i32, message = "nd,md->nm"}> : () -> ()
    %cst_28 = arith.constant dense<0.000000e+00> : vector<128x128xf32>
    %54 = tpu.matmul %49, %51, %cst_28 {dimension_numbers = #tpu.dot_dimension_numbers<[1], [1], [0], [0], [0, 0, 1, 0], [], []>} : vector<128x8xbf16>, vector<128x8xbf16>, vector<128x128xf32> -> vector<128x128xf32>
    "tpu.trace_stop"() : () -> ()
    %c1 = arith.constant 1 : index
    %c0_29 = arith.constant 0 : index
    %c0_30 = arith.constant 0 : index
    %55 = vector.load %arg4[%c1, %c0_29, %c0_30] : memref<2x128x128xf32, #tpu.memory_space<vmem>>, vector<1x128x128xf32>
    %56 = vector.shape_cast %55 : vector<1x128x128xf32> to vector<128x128xf32>
    %57 = arith.addf %54, %56 : vector<128x128xf32>
    %cst_31 = arith.constant dense<0xFF800000> : vector<128xf32>
    %58 = vector.multi_reduction <maximumf>, %57, %cst_31 [1] : vector<128x128xf32> to vector<128xf32>
    %59 = vector.shape_cast %58 : vector<128xf32> to vector<128x1xf32>
    %60 = vector.broadcast %59 : vector<128x1xf32> to vector<128x128xf32>
    %61 = arith.subf %57, %60 : vector<128x128xf32>
    %62 = math.exp %61 : vector<128x128xf32>
    %cst_32 = arith.constant dense<0.000000e+00> : vector<128xf32>
    %63 = vector.multi_reduction <add>, %62, %cst_32 [1] : vector<128x128xf32> to vector<128xf32>
    %64 = vector.shape_cast %63 : vector<128xf32> to vector<128x1xf32>
    %65 = tpu.reciprocal %64 {approx = true} : vector<128x1xf32> -> vector<128x1xf32>
    %66 = vector.broadcast %65 : vector<128x1xf32> to vector<128x128xf32>
    %67 = arith.mulf %62, %66 : vector<128x128xf32>
    %68 = arith.truncf %67 : vector<128x128xf32> to vector<128x128xbf16>
    %cst_33 = arith.constant dense<0.000000e+00> : vector<128x16xf32>
    %69 = tpu.matmul %68, %53, %cst_33 {dimension_numbers = #tpu.dot_dimension_numbers<[1], [0], [0], [1], [0, 0, 1, 1], [], []>} : vector<128x128xbf16>, vector<128x16xbf16>, vector<128x16xf32> -> vector<128x16xf32>
    %cst_34 = arith.constant 3.000000e+00 : f32
    %70 = vector.broadcast %cst_34 : f32 to vector<128x16xf32>
    %71 = arith.addf %69, %70 : vector<128x16xf32>
    %cst_35 = arith.constant 0.000000e+00 : f32
    %cst_36 = arith.constant 6.000000e+00 : f32
    %72 = vector.broadcast %cst_35 : f32 to vector<128x16xf32>
    %73 = arith.maximumf %72, %71 : vector<128x16xf32>
    %74 = vector.broadcast %cst_36 : f32 to vector<128x16xf32>
    %75 = arith.minimumf %74, %73 : vector<128x16xf32>
    %76 = arith.mulf %69, %75 : vector<128x16xf32>
    %cst_37 = arith.constant 0.166666672 : f32
    %77 = vector.broadcast %cst_37 : f32 to vector<128x16xf32>
    %78 = arith.mulf %76, %77 : vector<128x16xf32>
    %79 = arith.truncf %78 : vector<128x16xf32> to vector<128x16xbf16>
    %c0_38 = arith.constant 0 : index
    %c0_39 = arith.constant 0 : index
    %80 = vector.load %arg8[%c0_38, %c0_39] : memref<128x32xf32, #tpu.memory_space<vmem>>, vector<128x32xf32>
    %c1_40 = arith.constant 1 : index
    %c0_41 = arith.constant 0 : index
    %c0_42 = arith.constant 0 : index
    %81 = vector.load %arg5[%c1_40, %c0_41, %c0_42] : memref<2x16x32xbf16, #tpu.memory_space<vmem>>, vector<1x16x32xbf16>
    %82 = vector.shape_cast %81 : vector<1x16x32xbf16> to vector<16x32xbf16>
    %cst_43 = arith.constant dense<0.000000e+00> : vector<128x32xf32>
    %83 = tpu.matmul %79, %82, %cst_43 {dimension_numbers = #tpu.dot_dimension_numbers<[1], [0], [0], [1], [0, 0, 1, 1], [], []>} : vector<128x16xbf16>, vector<16x32xbf16>, vector<128x32xf32> -> vector<128x32xf32>
    %84 = arith.addf %80, %83 : vector<128x32xf32>
    %c0_44 = arith.constant 0 : index
    %c0_45 = arith.constant 0 : index
    %85 = vector.load %arg8[%c0_44, %c0_45] : memref<128x32xf32, #tpu.memory_space<vmem>>, vector<128x32xf32>
    tpu.vector_store %arg8[%c0_44, %c0_45], %84 {strides = array<i32>} : memref<128x32xf32, #tpu.memory_space<vmem>>, vector<128x32xf32>,
    %c0_46 = arith.constant 0 : index
    %c0_47 = arith.constant 0 : index
    %86 = vector.load %arg8[%c0_46, %c0_47] : memref<128x32xf32, #tpu.memory_space<vmem>>, vector<128x32xf32>
    %c0_48 = arith.constant 0 : index
    %c0_49 = arith.constant 0 : index
    %87 = vector.load %arg6[%c0_48, %c0_49] : memref<1x32xf32, #tpu.memory_space<vmem>>, vector<1x32xf32>
    %88 = vector.broadcast %87 : vector<1x32xf32> to vector<128x32xf32>
    %89 = arith.addf %86, %88 : vector<128x32xf32>
    %90 = vector.shape_cast %89 : vector<128x32xf32> to vector<8x16x32xf32>
    %c0_50 = arith.constant 0 : index
    %c0_51 = arith.constant 0 : index
    %c0_52 = arith.constant 0 : index
    %91 = vector.load %arg7[%c0_50, %c0_51, %c0_52] : memref<8x16x32xf32, #tpu.memory_space<vmem>>, vector<8x16x32xf32>
    tpu.vector_store %arg7[%c0_50, %c0_51, %c0_52], %90 {strides = array<i32>} : memref<8x16x32xf32, #tpu.memory_space<vmem>>, vector<8x16x32xf32>,
    return
  }
  func.func @transform_0(%arg0: i32) -> (i32, i32, i32) {
    %c0_i32 = arith.constant 0 : i32
    %c0_i32_0 = arith.constant 0 : i32
    %c0_i32_1 = arith.constant 0 : i32
    return %arg0, %c0_i32, %c0_i32_0 : i32, i32, i32
  }
  func.func @transform_1(%arg0: i32) -> (i32, i32) {
    %c0_i32 = arith.constant 0 : i32
    %c0_i32_0 = arith.constant 0 : i32
    %c0_i32_1 = arith.constant 0 : i32
    return %c0_i32, %c0_i32_0 : i32, i32
  }
  func.func @transform_2(%arg0: i32) -> (i32, i32) {
    %c0_i32 = arith.constant 0 : i32
    %c0_i32_0 = arith.constant 0 : i32
    %c0_i32_1 = arith.constant 0 : i32
    return %c0_i32, %c0_i32_0 : i32, i32
  }
  func.func @transform_3(%arg0: i32) -> (i32, i32, i32) {
    %c0_i32 = arith.constant 0 : i32
    %c0_i32_0 = arith.constant 0 : i32
    %c0_i32_1 = arith.constant 0 : i32
    %c0_i32_2 = arith.constant 0 : i32
    return %c0_i32, %c0_i32_0, %c0_i32_1 : i32, i32, i32
  }
  func.func @transform_4(%arg0: i32) -> (i32, i32, i32) {
    %c0_i32 = arith.constant 0 : i32
    %c0_i32_0 = arith.constant 0 : i32
    %c0_i32_1 = arith.constant 0 : i32
    %c0_i32_2 = arith.constant 0 : i32
    return %c0_i32, %c0_i32_0, %c0_i32_1 : i32, i32, i32
  }
  func.func @transform_5(%arg0: i32) -> (i32, i32) {
    %c0_i32 = arith.constant 0 : i32
    %c0_i32_0 = arith.constant 0 : i32
    %c0_i32_1 = arith.constant 0 : i32
    return %c0_i32, %c0_i32_0 : i32, i32
  }
  func.func @transform_6(%arg0: i32) -> (i32, i32, i32) {
    %c0_i32 = arith.constant 0 : i32
    %c0_i32_0 = arith.constant 0 : i32
    %c0_i32_1 = arith.constant 0 : i32
    return %arg0, %c0_i32, %c0_i32_0 : i32, i32, i32
  }
}

</mosaic_0001>

<bundles_post_ra>
// kernel: tpu_custom_call.1
= control target key start
LH: loop header
LB: loop body
LE: loop exit
PB: predicated region body
PF: predicated region fallthrough
CT: control target
= control target key end

     0   :  { %11 = vsyncpa [#allocation4], 0  ;;  %s3139_s0 = inlined_call_operand.hbm [shape: f32[8,16,32], index: 0, kind: input, shape index: {}]   ;;  %s3140_s1 = inlined_call_operand.hbm [shape: bf16[32,64], index: 1, kind: input, shape index: {}]   ;;  %s3141_s2 = inlined_call_operand.vmem [shape: f32[1,64], index: 2, kind: input, shape index: {}]   ;;  %s3142_s3 = inlined_call_operand.hbm [shape: f32[2,128,128], index: 3, kind: input, shape index: {}]   ;;  %s3143_s4 = inlined_call_operand.hbm [shape: bf16[2,16,32], index: 4, kind: input, shape index: {}]   ;;  %s3144_s5 = inlined_call_operand.vmem [shape: f32[1,32], index: 5, kind: input, shape index: {}]   ;;  %s3145_s6 = inlined_call_operand.hbm [shape: f32[8,16,32], index: 6, kind: output, shape index: {}]  }
   0x1   :  { %12 = vsyncpa [#allocation7], 0 }
   0x2   :  { %13 = vsyncpa [#allocation10], 0 }
   0x3   :  { %14 = vsyncpa [#allocation5], 0  ;;  %s2408_s21 = smov [#allocation6]   ;;  %s2290_s25 = scalar_lea.hbm %s3140_s1, 256 }
   0x4   :  { %s32_s22 = sshll.u32 %s2408_s21, 4  ;;  %p2291_p0 = scmp.ne.s32.totalorder %s3140_s1, %s2290_s25  ;;  %s33_s22 = int_to_ptr.vmem [resolvable:$true] %s32_s22 }
   0x5   :  { %p2294_p1 = scmp.lt.u32.totalorder %s2290_s25, %s3140_s1 }
   0x7   :  { %p2296_p2 = pnand %p2294_p1, %p2291_p0 }
   0x9   :  { %2299 = shalt.err (!%p2296_p2)
}
   0xa   :  { %s2300_s30 = scalar_lea.vmem %s33_s22, 256  ;;  %p2305_p4 = scmp.lt.s32.totalorder %s33_s22, %s33_s22 }
   0xb   :  { %p2301_p3 = scmp.ne.s32.totalorder %s33_s22, %s2300_s30  ;;  %p2306_p5 = scmp.lt.s32.totalorder %s2300_s30, %s2300_s30 }
   0xd   :  { %p2307_p6 = por %p2306_p5, %p2305_p4 }
   0xf   :  { %p2308_p7 = pnand %p2307_p6, %p2301_p3 }
  0x11   :  { %2311 = shalt.err (!%p2308_p7)
}
  0x12   :  { %s2409_s7 = smov 64   ;;  %s2410_s8 = smov 4  }
  0x13   :  { %38 = dma.hbm_to_vmem [thread:$0]  %s3140_s1, 256, %s33_s22, [#allocation7], %s2409_s7, %s2409_s7, %s2410_s8  }
  0x14   :  { %s2411_s11 = smov [#allocation3]   ;;  %s2312_s15 = scalar_lea.hbm %s3139_s0, 2048 }
  0x15   :  { %s20_s12 = sshll.u32 %s2411_s11, 4  ;;  %p2313_p8 = scmp.ne.s32.totalorder %s3139_s0, %s2312_s15  ;;  %s21_s12 = int_to_ptr.vmem [resolvable:$true] %s20_s12 }
  0x16   :  { %p2316_p9 = scmp.lt.u32.totalorder %s2312_s15, %s3139_s0 }
  0x18   :  { %p2318_p10 = pnand %p2316_p9, %p2313_p8 }
  0x1a   :  { %2321 = shalt.err (!%p2318_p10)
}
  0x1b   :  { %s2322_s20 = scalar_lea.vmem %s21_s12, 2048  ;;  %p2327_p12 = scmp.lt.s32.totalorder %s21_s12, %s21_s12 }
  0x1c   :  { %p2323_p11 = scmp.ne.s32.totalorder %s21_s12, %s2322_s20  ;;  %p2328_p13 = scmp.lt.s32.totalorder %s2322_s20, %s2322_s20 }
  0x1e   :  { %p2329_p0 = por %p2328_p13, %p2327_p12 }
  0x20   :  { %p2330_p1 = pnand %p2329_p0, %p2323_p11 }
  0x22   :  { %2333 = shalt.err (!%p2330_p1)
}
  0x23   :  { %s2412_s1 = smov 128   ;;  %s2413_s21 = smov 8  }
  0x24   :  { %26 = dma.hbm_to_vmem [thread:$0]  %s3139_s0, 2048, %s21_s12, [#allocation4], %s2412_s1, %s2412_s1, %s2413_s21  }
  0x25   :  { %s2414_s24 = smov [#allocation8]   ;;  %s2415_s26 = smov [#allocation9]  }
  0x26   :  { %s46_s25 = sshll.u32 %s2414_s24, 4  ;;  %s58_s27 = sshll.u32 %s2415_s26, 4  ;;  %s47_s25 = int_to_ptr.vmem [resolvable:$true] %s46_s25  ;;  %s2488_s27 = int_to_ptr.vmem [resolvable:$true] %s58_s27 }
  0x27   :  { %s2334_s30 = scalar_lea.hbm %s3142_s3, 4096 }
  0x28   :  { %p2335_p2 = scmp.ne.s32.totalorder %s3142_s3, %s2334_s30  ;;  %p2338_p3 = scmp.lt.u32.totalorder %s2334_s30, %s3142_s3 }
  0x2a   :  { %p2340_p4 = pnand %p2338_p3, %p2335_p2 }
  0x2c   :  { %2343 = shalt.err (!%p2340_p4)
}
  0x2d   :  { %s2344_s0 = scalar_lea.vmem %s47_s25, 4096  ;;  %p2349_p6 = scmp.lt.s32.totalorder %s47_s25, %s47_s25 }
  0x2e   :  { %p2345_p5 = scmp.ne.s32.totalorder %s47_s25, %s2344_s0  ;;  %p2350_p7 = scmp.lt.s32.totalorder %s2344_s0, %s2344_s0 }
  0x30   :  { %p2351_p8 = por %p2350_p7, %p2349_p6 }
  0x32   :  { %p2352_p9 = pnand %p2351_p8, %p2345_p5 }
  0x34   :  { %2355 = shalt.err (!%p2352_p9)
}
  0x35   :  { %52 = dma.hbm_to_vmem [thread:$0]  %s3142_s3, 4096, %s47_s25, [#allocation7], %s2412_s1, %s2412_s1, %s2413_s21  }
  0x36   :  { %s2356_s17 = scalar_lea.hbm %s3143_s4, 256 }
  0x37   :  { %p2357_p10 = scmp.ne.s32.totalorder %s3143_s4, %s2356_s17  ;;  %p2360_p11 = scmp.lt.u32.totalorder %s2356_s17, %s3143_s4 }
  0x39   :  { %p2362_p12 = pnand %p2360_p11, %p2357_p10 }
  0x3b   :  { %2365 = shalt.err (!%p2362_p12)
}
  0x3c   :  { %s2366_s23 = scalar_lea.vmem %s2488_s27, 256  ;;  %p2371_p0 = scmp.lt.s32.totalorder %s2488_s27, %s2488_s27 }
  0x3d   :  { %p2367_p13 = scmp.ne.s32.totalorder %s2488_s27, %s2366_s23  ;;  %p2372_p1 = scmp.lt.s32.totalorder %s2366_s23, %s2366_s23 }
  0x3f   :  { %p2373_p2 = por %p2372_p1, %p2371_p0 }
  0x41   :  { %p2374_p3 = pnand %p2373_p2, %p2367_p13 }
  0x43   :  { %2377 = shalt.err (!%p2374_p3)
}
  0x44   :  { %64 = dma.hbm_to_vmem [thread:$0]  %s3143_s4, 256, %s2488_s27, [#allocation10], %s2409_s7, %s2409_s7, %s2410_s8  }
  0x45   :  { %2400 = dma.done.wait [#allocation4], 2048  }
  0x46   :  { %2401 = vsyncadd [#allocation4], 4294965248 }
  0x47   :  { %2402 = dma.done.wait [#allocation7], 4352  }
  0x48   :  { %2403 = vsyncadd [#allocation7], 4294962944 }
  0x49   :  { %2404 = dma.done.wait [#allocation10], 256  }
  0x4a   :  { %2405 = vsyncadd [#allocation10], 4294967040  ;;  %v2158_v0 = vld [vmem:[#allocation6] sm:$0xff]   ;;  %v2159_v1 = vld [vmem:[#allocation6 + $0x8] sm:$0xff]   ;;  %vm127_vm0 = vcmask 261120   ;;  %vm313_vm1 = vcmask 64512  }
  0x4b   :  { %1943 = vmatprep.subr.bf16.mxu0 %v2158_v0  ;;  %v80_v2 = vld [vmem:[#allocation3] sm:$0xff]  ;;  %v81_v3 = vld [vmem:[#allocation3 + $0x8] sm:$0xff]  ;;  %v82_v5 = vld [vmem:[#allocation3 + $0x10] sm:$0xff]  ;;  %s2416_s8 = smov 120   ;;  %s2418_s25 = smov 96   ;;  %vm844_vm2 = vcmask 130048  }
  0x4c   :  { %1944 = vmatpush3.bf16.msra.mxu0 %v2158_v0  ;;  %v96_v4 = vpack.c.bf16 %v81_v3, %v80_v2  ;;  %v83_v6 = vld [vmem:[#allocation3 + $0x18] sm:$0xff]  ;;  %v84_v7 = vld [vmem:[#allocation3 + $0x20] sm:$0xff]  ;;  %v85_v8 = vld [vmem:[#allocation3 + $0x28] sm:$0xff]  ;;  %s2419_s26 = smov 112   ;;  %s2420_s27 = smov 80  }
  0x4d   :  { %1945 = vmatprep.subr.bf16.mxu0 %v2159_v1  ;;  %v97_v9 = vpack.c.bf16 %v83_v6, %v82_v5  ;;  %v98_v10 = vpack.c.bf16 %v85_v8, %v84_v7  ;;  %v86_v11 = vld [vmem:[#allocation3 + $0x30] sm:$0xff]  ;;  %v87_v12 = vld [vmem:[#allocation3 + $0x38] sm:$0xff]  ;;  %v88_v13 = vld [vmem:[#allocation3 + $0x40] sm:$0xff] }
  0x4e   :  { %1947 = vmatprep.mubr.msk.bf16.mxu0 %vm127_vm0, %v96_v4  ;;  %v89_v14 = vld [vmem:[#allocation3 + $0x48] sm:$0xff]  ;;  %v99_v15 = vpack.c.bf16 %v87_v12, %v86_v11  ;;  %v90_v17 = vld [vmem:[#allocation3 + $0x50] sm:$0xff]  ;;  %v91_v18 = vld [vmem:[#allocation3 + $0x58] sm:$0xff] }
  0x4f   :  { %v100_v16 = vpack.c.bf16 %v89_v14, %v88_v13  ;;  %v92_v19 = vld [vmem:[#allocation3 + $0x60] sm:$0xff]  ;;  %v93_v20 = vld [vmem:[#allocation3 + $0x68] sm:$0xff]  ;;  %v101_v21 = vpack.c.bf16 %v91_v18, %v90_v17  ;;  %v94_v23 = vld [vmem:[#allocation3 + $0x70] sm:$0xff] }
  0x50   :  { %1946 = vmatpush3.bf16.msra.mxu0 %v2159_v1  ;;  %v102_v22 = vpack.c.bf16 %v93_v20, %v92_v19  ;;  %v95_v24 = vld [vmem:[#allocation3 + $0x78] sm:$0xff]  ;;  %v1805_v27 = vld [vmem:[%s3141_s2] ss:$0 sm:$0xff]  ;;  %s2417_s2 = smov 88  }
  0x51   :  { %v103_v25 = vpack.c.bf16 %v95_v24, %v94_v23 }
  0x53   :  { %1948 = vmatmul.mubr.msk.bf16.vlgmr.msra.gmra.mrb[0].mxu0 %vm127_vm0, %v97_v9 }
  0x54   :  { %1951 = vmatprep.mubr.msk.bf16.mxu0 %vm127_vm0, %v98_v10 }
  0x5b   :  { %1952 = vmatmul.mubr.msk.bf16.gmra.mrb[4].mxu0 %vm127_vm0, %v99_v15 }
  0x5c   :  { %1955 = vmatprep.mubr.msk.bf16.mxu0 %vm127_vm0, %v100_v16 }
  0x63   :  { %1956 = vmatmul.mubr.msk.bf16.gmra.mrb[8].mxu0 %vm127_vm0, %v101_v21 }
  0x64   :  { %1959 = vmatprep.mubr.msk.bf16.mxu0 %vm127_vm0, %v102_v22 }
  0x6b   :  { %1960 = vmatmul.mubr.msk.bf16.gmra.mrb[12].mxu0 %vm127_vm0, %v103_v25 }
 0x126   :  { %v1949_v26 = vpop.f32.mrb[0].mxu0 }
 0x127   :  { %v186_v28 = vpop.f32.mrb[1].mxu0  ;;  %v195_v30 = vadd.f32 %v1949_v26, %v1805_v27 }
 0x128   :  { %v1950_v29 = vpop.f32.mrb[2].mxu0  ;;  %v187_v33 = vadd.f32 %v1805_v27, %v186_v28 }
 0x129   :  { %v198_v31 = vadd.f32 %v1950_v29, %v1805_v27  ;;  %v189_v32 = vpop.f32.mrb[3].mxu0 }
 0x12a   :  { %v190_v34 = vadd.f32 %v1805_v27, %v189_v32 }
 0x12b   :  { %v2536_v35 = vpack.c.bf16 %v198_v31, %v195_v30 }
 0x12c   :  { %v2538_v36 = vpack.c.bf16 %v190_v34, %v187_v33 }
 0x12e   :  { %297 = vrot.lane.b32.xlu0 %v2538_v36, %s2416_s8  ;;  %1979 = vmatprep.mubr.msk.bf16.mxu1 %vm313_vm1, %v2538_v36  ;;  %v1953_v37 = vpop.f32.mrb[4].mxu0 }
 0x12f   :  { %v211_v38 = vadd.f32 %v1953_v37, %v1805_v27  ;;  %v202_v39 = vpop.f32.mrb[5].mxu0 }
 0x130   :  { %v203_v40 = vadd.f32 %v1805_v27, %v202_v39  ;;  %v1954_v41 = vpop.f32.mrb[6].mxu0 }
 0x131   :  { %v214_v42 = vadd.f32 %v1954_v41, %v1805_v27  ;;  %v205_v43 = vpop.f32.mrb[7].mxu0 }
 0x132   :  { %v206_v44 = vadd.f32 %v1805_v27, %v205_v43  ;;  %299 = vrot.lane.b32.xlu0 %v2536_v35, %s2416_s8 }
 0x133   :  { %v2546_v45 = vpack.c.bf16 %v214_v42, %v211_v38 }
 0x134   :  { %v2548_v46 = vpack.c.bf16 %v206_v44, %v203_v40  ;;  %v275_v44 = vld [vmem:[#allocation8 + $0x10] sm:$0xff] }
 0x136   :  { %301 = vrot.lane.b32.xlu1 %v2548_v46, %s2416_s8  ;;  %v1957_v47 = vpop.f32.mrb[8].mxu0 }
 0x137   :  { %v227_v48 = vadd.f32 %v1957_v47, %v1805_v27  ;;  %v218_v49 = vpop.f32.mrb[9].mxu0  ;;  %v273_v47 = vld [vmem:[#allocation8] sm:$0xff] }
 0x138   :  { %v219_v50 = vadd.f32 %v1805_v27, %v218_v49  ;;  %v1958_v51 = vpop.f32.mrb[10].mxu0 }
 0x139   :  { %v230_v52 = vadd.f32 %v1958_v51, %v1805_v27  ;;  %v221_v53 = vpop.f32.mrb[11].mxu0 }
 0x13a   :  { %303 = vrot.lane.b32.xlu1 %v2546_v45, %s2416_s8  ;;  %v222_v54 = vadd.f32 %v1805_v27, %v221_v53 }
 0x13b   :  { %v2554_v55 = vpack.c.bf16 %v230_v52, %v227_v48  ;;  %v276_v52 = vld [vmem:[#allocation8 + $0x18] sm:$0xff] }
 0x13c   :  { %v2556_v56 = vpack.c.bf16 %v222_v54, %v219_v50 }
 0x13e   :  { %v1961_v57 = vpop.f32.mrb[12].mxu0  ;;  %307 = vrot.lane.b32.xlu1 %v2554_v55, %s2416_s8  ;;  %305 = vrot.lane.b32.xlu0 %v2556_v56, %s2416_s8 }
 0x13f   :  { %v243_v58 = vadd.f32 %v1961_v57, %v1805_v27  ;;  %v234_v59 = vpop.f32.mrb[13].mxu0 }
 0x140   :  { %v235_v60 = vadd.f32 %v1805_v27, %v234_v59  ;;  %v1962_v61 = vpop.f32.mrb[14].mxu0  ;;  %v277_v59 = vld [vmem:[#allocation8 + $0x20] sm:$0xff] }
 0x141   :  { %v246_v62 = vadd.f32 %v1962_v61, %v1805_v27  ;;  %v237_v63 = vpop.f32.mrb[15].mxu0 }
 0x142   :  { %v238_v0 = vadd.f32 %v1805_v27, %v237_v63  ;;  %v279_v63 = vld [vmem:[#allocation8 + $0x30] sm:$0xff] }
 0x143   :  { %v2562_v1 = vpack.c.bf16 %v246_v62, %v243_v58  ;;  %v274_v58 = vld [vmem:[#allocation8 + $0x8] sm:$0xff] }
 0x144   :  { %v2564_v2 = vpack.c.bf16 %v238_v0, %v235_v60 }
 0x145   :  { %311 = vrot.lane.b32.xlu1 %v2562_v1, %s2416_s8 }
 0x146   :  { %309 = vrot.lane.b32.xlu0 %v2564_v2, %s2416_s8 }
 0x149   :  { %1033 = vrot.lane.b32.xlu1 %v2536_v35, %s2417_s2 }
 0x14a   :  { %1031 = vrot.lane.b32.xlu0 %v2538_v36, %s2417_s2 }
 0x14d   :  { %1037 = vrot.lane.b32.xlu1 %v2546_v45, %s2417_s2 }
 0x14e   :  { %1035 = vrot.lane.b32.xlu0 %v2548_v46, %s2417_s2 }
 0x151   :  { %1041 = vrot.lane.b32.xlu1 %v2554_v55, %s2417_s2 }
 0x152   :  { %1039 = vrot.lane.b32.xlu0 %v2556_v56, %s2417_s2 }
 0x155   :  { %1045 = vrot.lane.b32.xlu1 %v2562_v1, %s2417_s2 }
 0x156   :  { %1015 = vrot.lane.b32.xlu0 %v2538_v36, %s2418_s25 }
 0x159   :  { %1017 = vrot.lane.b32.xlu1 %v2536_v35, %s2418_s25 }
 0x15a   :  { %1019 = vrot.lane.b32.xlu0 %v2548_v46, %s2418_s25 }
 0x15d   :  { %1021 = vrot.lane.b32.xlu1 %v2546_v45, %s2418_s25 }
 0x15e   :  { %1023 = vrot.lane.b32.xlu0 %v2556_v56, %s2418_s25 }
 0x161   :  { %1025 = vrot.lane.b32.xlu1 %v2554_v55, %s2418_s25 }
 0x162   :  { %1043 = vrot.lane.b32.xlu0 %v2564_v2, %s2417_s2 }
 0x166   :  { %1027 = vrot.lane.b32.xlu0 %v2564_v2, %s2418_s25 }
 0x1a0   :  { %v298_v3 = vpop.permute.xlu0 %297 }
 0x1a1   :  { %2127 = vmatprep.subr.msk.bf16.mxu1 %vm313_vm1, %v298_v3  ;;  %v339_v4 = vsel %vm313_vm1, %v298_v3, 0 }
 0x1a2   :  { %1964 = vmatpush3.bf16.xpose.msra.mxu1 %v339_v4 }
 0x1a4   :  { %v300_v5 = vpop.permute.xlu0 %299 }
 0x1a5   :  { %2128 = vmatprep.subr.msk.bf16.mxu1 %vm313_vm1, %v300_v5  ;;  %v342_v6 = vsel %vm313_vm1, %v300_v5, 0 }
 0x1a8   :  { %v302_v7 = vpop.permute.xlu1 %301 }
 0x1a9   :  { %v345_v8 = vsel %vm313_vm1, %v302_v7, 0 }
 0x1aa   :  { %1966 = vmatpush3.bf16.xpose.msra.mxu1 %v342_v6  ;;  %v280_v6 = vld [vmem:[#allocation8 + $0x38] sm:$0xff] }
 0x1ab   :  { %2129 = vmatprep.subr.msk.bf16.mxu1 %vm313_vm1, %v302_v7  ;;  %v281_v7 = vld [vmem:[#allocation8 + $0x40] sm:$0xff] }
 0x1ac   :  { %v304_v9 = vpop.permute.xlu1 %303 }
 0x1ad   :  { %v348_v10 = vsel %vm313_vm1, %v304_v9, 0 }
 0x1b0   :  { %v306_v11 = vpop.permute.xlu0 %305  ;;  %v308_v13 = vpop.permute.xlu1 %307 }
 0x1b1   :  { %v351_v12 = vsel %vm313_vm1, %v306_v11, 0  ;;  %v354_v14 = vsel %vm313_vm1, %v308_v13, 0 }
 0x1b2   :  { %1968 = vmatpush3.bf16.xpose.msra.mxu1 %v345_v8 }
 0x1b3   :  { %2130 = vmatprep.subr.msk.bf16.mxu1 %vm313_vm1, %v304_v9 }
 0x1b7   :  { %v312_v17 = vpop.permute.xlu1 %311 }
 0x1b8   :  { %v310_v15 = vpop.permute.xlu0 %309  ;;  %v360_v18 = vsel %vm313_vm1, %v312_v17, 0 }
 0x1b9   :  { %v357_v16 = vsel %vm313_vm1, %v310_v15, 0 }
 0x1ba   :  { %1970 = vmatpush3.bf16.xpose.msra.mxu1 %v348_v10 }
 0x1bb   :  { %2131 = vmatprep.subr.msk.bf16.mxu1 %vm313_vm1, %v306_v11  ;;  %v1034_v21 = vpop.permute.xlu1 %1033  ;;  %v278_v11 = vld [vmem:[#allocation8 + $0x28] sm:$0xff] }
 0x1bc   :  { %v1032_v19 = vpop.permute.xlu0 %1031  ;;  %v1075_v22 = vsel %vm313_vm1, %v1034_v21, 0 }
 0x1bd   :  { %v1072_v20 = vsel %vm313_vm1, %v1032_v19, 0 }
 0x1bf   :  { %v1038_v25 = vpop.permute.xlu1 %1037 }
 0x1c0   :  { %v1036_v23 = vpop.permute.xlu0 %1035  ;;  %v1081_v28 = vsel %vm313_vm1, %v1038_v25, 0 }
 0x1c1   :  { %v1078_v24 = vsel %vm313_vm1, %v1036_v23, 0 }
 0x1c2   :  { %1972 = vmatpush3.bf16.xpose.msra.mxu1 %v351_v12 }
 0x1c3   :  { %2132 = vmatprep.subr.msk.bf16.mxu1 %vm313_vm1, %v308_v13  ;;  %v1042_v31 = vpop.permute.xlu1 %1041 }
 0x1c4   :  { %v1040_v26 = vpop.permute.xlu0 %1039  ;;  %v1087_v33 = vsel %vm313_vm1, %v1042_v31, 0 }
 0x1c5   :  { %v1084_v30 = vsel %vm313_vm1, %v1040_v26, 0 }
 0x1c7   :  { %v1046_v38 = vpop.permute.xlu1 %1045 }
 0x1c8   :  { %v1016_v27 = vpop.permute.xlu0 %1015  ;;  %v1093_v39 = vsel %vm313_vm1, %v1046_v38, 0 }
 0x1ca   :  { %1974 = vmatpush3.bf16.xpose.msra.mxu1 %v354_v14  ;;  %v283_v14 = vld [vmem:[#allocation8 + $0x50] sm:$0xff] }
 0x1cb   :  { %2133 = vmatprep.subr.msk.bf16.mxu1 %vm313_vm1, %v310_v15  ;;  %v1018_v40 = vpop.permute.xlu1 %1017 }
 0x1cc   :  { %v1020_v29 = vpop.permute.xlu0 %1019 }
 0x1cf   :  { %v1022_v41 = vpop.permute.xlu1 %1021 }
 0x1d0   :  { %v1024_v32 = vpop.permute.xlu0 %1023 }
 0x1d2   :  { %1976 = vmatpush3.bf16.xpose.msra.mxu1 %v357_v16 }
 0x1d3   :  { %2134 = vmatprep.subr.msk.bf16.mxu1 %vm313_vm1, %v312_v17  ;;  %v1026_v42 = vpop.permute.xlu1 %1025 }
 0x1d4   :  { %v1044_v34 = vpop.permute.xlu0 %1043 }
 0x1d5   :  { %v1090_v37 = vsel %vm313_vm1, %v1044_v34, 0 }
 0x1d8   :  { %v1028_v43 = vpop.permute.xlu0 %1027 }
 0x1da   :  { %1978 = vmatpush3.bf16.xpose.msra.mxu1 %v360_v18  ;;  %v284_v18 = vld [vmem:[#allocation8 + $0x58] sm:$0xff] }
 0x1db   :  { %2135 = vmatprep.subr.msk.bf16.mxu1 %vm313_vm1, %v1032_v19 }
 0x1e1   :  { %1980 = vmatmul.mubr.msk.bf16.vlgmr.msra.gmra.mrb[0].mxu1 %vm313_vm1, %v2536_v35 }
 0x1e2   :  { %1983 = vmatprep.mubr.msk.bf16.mxu1 %vm313_vm1, %v2548_v46  ;;  %2046 = vmatpush3.bf16.xpose.msra.mxu1 %v1072_v20 }
 0x1e3   :  { %2136 = vmatprep.subr.msk.bf16.mxu1 %vm313_vm1, %v1034_v21 }
 0x1e9   :  { %1984 = vmatmul.mubr.msk.bf16.gmra.mrb[4].mxu1 %vm313_vm1, %v2546_v45 }
 0x1ea   :  { %1987 = vmatprep.mubr.msk.bf16.mxu1 %vm313_vm1, %v2556_v56  ;;  %2048 = vmatpush3.bf16.xpose.msra.mxu1 %v1075_v22 }
 0x1eb   :  { %2137 = vmatprep.subr.msk.bf16.mxu1 %vm313_vm1, %v1036_v23 }
 0x1f1   :  { %1988 = vmatmul.mubr.msk.bf16.gmra.mrb[8].mxu1 %vm313_vm1, %v2554_v55 }
 0x1f2   :  { %1991 = vmatprep.mubr.msk.bf16.mxu1 %vm313_vm1, %v2564_v2  ;;  %2050 = vmatpush3.bf16.xpose.msra.mxu1 %v1078_v24 }
 0x1f3   :  { %2138 = vmatprep.subr.msk.bf16.mxu1 %vm313_vm1, %v1038_v25 }
 0x1f9   :  { %1992 = vmatmul.mubr.msk.bf16.gmra.mrb[12].mxu1 %vm313_vm1, %v2562_v1 }
 0x1fa   :  { %2052 = vmatpush3.bf16.xpose.msra.mxu1 %v1081_v28  ;;  %2061 = vmatprep.mubr.msk.bf16.mxu1 %vm313_vm1, %v1016_v27  ;;  %v282_v28 = vld [vmem:[#allocation8 + $0x48] sm:$0xff] }
 0x1fb   :  { %2139 = vmatprep.subr.msk.bf16.mxu1 %vm313_vm1, %v1040_v26 }
 0x202   :  { %2054 = vmatpush3.bf16.xpose.msra.mxu1 %v1084_v30 }
 0x203   :  { %2140 = vmatprep.subr.msk.bf16.mxu1 %vm313_vm1, %v1042_v31 }
 0x20a   :  { %2056 = vmatpush3.bf16.xpose.msra.mxu1 %v1087_v33 }
 0x20b   :  { %2141 = vmatprep.subr.msk.bf16.mxu1 %vm313_vm1, %v1044_v34  ;;  %v287_v34 = vld [vmem:[#allocation8 + $0x70] sm:$0xff] }
 0x212   :  { %2058 = vmatpush3.bf16.xpose.msra.mxu1 %v1090_v37 }
 0x213   :  { %2142 = vmatprep.subr.msk.bf16.mxu1 %vm313_vm1, %v1046_v38 }
 0x21a   :  { %2060 = vmatpush3.bf16.xpose.msra.mxu1 %v1093_v39 }
 0x221   :  { %2062 = vmatmul.mubr.msk.bf16.vlgmr.msra.gmra.mrb[16].mxu1 %vm313_vm1, %v1018_v40 }
 0x222   :  { %2065 = vmatprep.mubr.msk.bf16.mxu1 %vm313_vm1, %v1020_v29 }
 0x229   :  { %2066 = vmatmul.mubr.msk.bf16.gmra.mrb[20].mxu1 %vm313_vm1, %v1022_v41 }
 0x22a   :  { %2069 = vmatprep.mubr.msk.bf16.mxu1 %vm313_vm1, %v1024_v32 }
 0x231   :  { %2070 = vmatmul.mubr.msk.bf16.gmra.mrb[24].mxu1 %vm313_vm1, %v1026_v42  ;;  %v285_v42 = vld [vmem:[#allocation8 + $0x60] sm:$0xff] }
 0x232   :  { %2073 = vmatprep.mubr.msk.bf16.mxu1 %vm313_vm1, %v1028_v43 }
 0x2b4   :  { %v1981_v48 = vpop.f32.mrb[0].mxu1 }
 0x2b5   :  { %v2645_v49 = vadd.f32 %v1981_v48, %v275_v44  ;;  %v396_v50 = vpop.f32.mrb[1].mxu1  ;;  %v288_v44 = vld [vmem:[#allocation8 + $0x78] sm:$0xff]  ;;  %v286_v48 = vld [vmem:[#allocation8 + $0x68] sm:$0xff] }
 0x2b6   :  { %v2647_v51 = vadd.f32 %v396_v50, %v273_v47  ;;  %v1982_v53 = vpop.f32.mrb[2].mxu1 }
 0x2b7   :  { %463 = vmax.xlane.f32.xlu1 %v2645_v49  ;;  %v399_v54 = vpop.f32.mrb[3].mxu1  ;;  %v2651_v57 = vadd.f32 %v1982_v53, %v276_v52 }
 0x2b8   :  { %459 = vmax.xlane.f32.xlu0 %v2647_v51  ;;  %v2654_v61 = vadd.f32 %v399_v54, %v274_v58 }
 0x2bb   :  { %465 = vmax.xlane.f32.xlu1 %v2651_v57 }
 0x2bc   :  { %v1985_v60 = vpop.f32.mrb[4].mxu1 }
 0x2bd   :  { %v412_v62 = vpop.f32.mrb[5].mxu1  ;;  %v2660_v5 = vadd.f32 %v1985_v60, %v279_v63 }
 0x2be   :  { %v2656_v0 = vadd.f32 %v412_v62, %v277_v59  ;;  %v1986_v3 = vpop.f32.mrb[6].mxu1 }
 0x2bf   :  { %v415_v4 = vpop.f32.mrb[7].mxu1  ;;  %461 = vmax.xlane.f32.xlu1 %v2654_v61  ;;  %v2663_v9 = vadd.f32 %v1986_v3, %v280_v6 }
 0x2c0   :  { %467 = vmax.xlane.f32.xlu0 %v2656_v0  ;;  %v2669_v16 = vadd.f32 %v415_v4, %v278_v11 }
 0x2c3   :  { %471 = vmax.xlane.f32.xlu1 %v2660_v5 }
 0x2c4   :  { %v1989_v8 = vpop.f32.mrb[8].mxu1 }
 0x2c5   :  { %v428_v10 = vpop.f32.mrb[9].mxu1  ;;  %v2671_v17 = vadd.f32 %v1989_v8, %v283_v14 }
 0x2c6   :  { %v2665_v12 = vadd.f32 %v428_v10, %v281_v7  ;;  %v1990_v13 = vpop.f32.mrb[10].mxu1 }
 0x2c7   :  { %v431_v15 = vpop.f32.mrb[11].mxu1  ;;  %473 = vmax.xlane.f32.xlu1 %v2663_v9  ;;  %v2675_v21 = vadd.f32 %v1990_v13, %v284_v18 }
 0x2c8   :  { %475 = vmax.xlane.f32.xlu0 %v2665_v12  ;;  %v2696_v31 = vadd.f32 %v431_v15, %v282_v28 }
 0x2cb   :  { %469 = vmax.xlane.f32.xlu1 %v2669_v16 }
 0x2cc   :  { %v1993_v19 = vpop.f32.mrb[12].mxu1  ;;  %479 = vmax.xlane.f32.xlu0 %v2671_v17 }
 0x2cd   :  { %v444_v20 = vpop.f32.mrb[13].mxu1  ;;  %v2709_v40 = vadd.f32 %v1993_v19, %v287_v34 }
 0x2ce   :  { %v1994_v22 = vpop.f32.mrb[14].mxu1  ;;  %v2714_v43 = vadd.f32 %v444_v20, %v285_v42 }
 0x2cf   :  { %v447_v23 = vpop.f32.mrb[15].mxu1  ;;  %v2717_v47 = vadd.f32 %v1994_v22, %v288_v44 }
 0x2d0   :  { %481 = vmax.xlane.f32.xlu0 %v2675_v21  ;;  %v2722_v50 = vadd.f32 %v447_v23, %v286_v48 }
 0x2dc   :  { %1029 = vrot.lane.b32.xlu1 %v2562_v1, %s2418_s25 }
 0x2e6   :  { %615 = vrot.lane.b32.xlu0 %v2548_v46, %s2419_s26 }
 0x2ea   :  { %619 = vrot.lane.b32.xlu0 %v2556_v56, %s2419_s26 }
 0x2f4   :  { %v2684_v24 = vpop.f32.mrb[16].mxu1 }
 0x2f5   :  { %v2686_v25 = vpop.f32.mrb[17].mxu1 }
 0x2f6   :  { %v2688_v26 = vpop.f32.mrb[18].mxu1 }
 0x2f7   :  { %v2690_v27 = vpop.f32.mrb[19].mxu1 }
 0x2fc   :  { %v2692_v29 = vpop.f32.mrb[20].mxu1 }
 0x2fd   :  { %v2694_v30 = vpop.f32.mrb[21].mxu1 }
 0x2fe   :  { %v2698_v32 = vpop.f32.mrb[22].mxu1 }
 0x2ff   :  { %v2700_v33 = vpop.f32.mrb[23].mxu1 }
 0x300   :  { %477 = vmax.xlane.f32.xlu1 %v2696_v31 }
 0x304   :  { %v2703_v37 = vpop.f32.mrb[24].mxu1 }
 0x305   :  { %v2705_v38 = vpop.f32.mrb[25].mxu1 }
 0x306   :  { %v2707_v39 = vpop.f32.mrb[26].mxu1 }
 0x307   :  { %v2711_v41 = vpop.f32.mrb[27].mxu1 }
 0x309   :  { %487 = vmax.xlane.f32.xlu0 %v2709_v40 }
 0x30d   :  { %483 = vmax.xlane.f32.xlu0 %v2714_v43 }
 0x311   :  { %611 = vrot.lane.b32.xlu1 %v2538_v36, %s2419_s26  ;;  %489 = vmax.xlane.f32.xlu0 %v2717_v47 }
 0x315   :  { %613 = vrot.lane.b32.xlu1 %v2536_v35, %s2419_s26  ;;  %485 = vmax.xlane.f32.xlu0 %v2722_v50 }
 0x319   :  { %617 = vrot.lane.b32.xlu1 %v2546_v45, %s2419_s26 }
 0x31d   :  { %623 = vrot.lane.b32.xlu1 %v2564_v2, %s2419_s26 }
 0x32b   :  { %621 = vrot.lane.b32.xlu0 %v2554_v55, %s2419_s26 }
 0x344   :  { %v464_v52 = vpop.xlane.xlu1 %463 }
 0x345   :  { %v493_v53 = vsub.f32 %v2645_v49, %v464_v52  ;;  %v460_v54 = vpop.xlane.xlu0 %459 }
 0x346   :  { %v491_v58 = vsub.f32 %v2647_v51, %v460_v54 }
 0x347   :  { %v511_v59 = vmul.f32 1.442695, %v493_v53 }
 0x348   :  { %v466_v60 = vpop.xlane.xlu1 %465  ;;  %v507_v62 = vmul.f32 1.442695, %v491_v58 }
 0x349   :  { %2162 = vpow2.f32 %v511_v59  ;;  %v494_v63 = vsub.f32 %v2651_v57, %v466_v60 }
 0x34a   :  { %2164 = vpow2.f32 %v507_v62 }
 0x34b   :  { %v513_v4 = vmul.f32 1.442695, %v494_v63 }
 0x34c   :  { %v462_v3 = vpop.xlane.xlu1 %461 }
 0x34d   :  { %v492_v6 = vsub.f32 %v2654_v61, %v462_v3  ;;  %v468_v7 = vpop.xlane.xlu0 %467  ;;  %2166 = vpow2.f32 %v513_v4 }
 0x34e   :  { %v495_v49 = vsub.f32 %v2656_v0, %v468_v7 }
 0x34f   :  { %v509_v8 = vmul.f32 1.442695, %v492_v6 }
 0x350   :  { %v472_v10 = vpop.xlane.xlu1 %471  ;;  %v515_v57 = vmul.f32 1.442695, %v495_v49 }
 0x351   :  { %v497_v11 = vsub.f32 %v2660_v5, %v472_v10  ;;  %2168 = vpow2.f32 %v509_v8 }
 0x353   :  { %v2739_v51 = vpop.eup %2162  ;;  %v519_v13 = vmul.f32 1.442695, %v497_v11 }
 0x354   :  { %v474_v14 = vpop.xlane.xlu1 %473  ;;  %543 = vadd.xlane.f32.xlu0 %v2739_v51  ;;  %v2743_v18 = vpop.eup %2164 }
 0x355   :  { %2170 = vpow2.f32 %v519_v13  ;;  %v498_v15 = vsub.f32 %v2663_v9, %v474_v14  ;;  %v476_v61 = vpop.xlane.xlu0 %475 }
 0x356   :  { %2172 = vpow2.f32 %v515_v57  ;;  %v499_v9 = vsub.f32 %v2665_v12, %v476_v61 }
 0x357   :  { %v521_v19 = vmul.f32 1.442695, %v498_v15  ;;  %v2748_v23 = vpop.eup %2166 }
 0x358   :  { %v470_v20 = vpop.xlane.xlu1 %469  ;;  %539 = vadd.xlane.f32.xlu0 %v2743_v18 }
 0x359   :  { %v496_v0 = vsub.f32 %v2669_v16, %v470_v20  ;;  %v480_v5 = vpop.xlane.xlu0 %479  ;;  %2174 = vpow2.f32 %v521_v19 }
 0x35a   :  { %v501_v22 = vsub.f32 %v2671_v17, %v480_v5  ;;  %v523_v17 = vmul.f32 1.442695, %v499_v9 }
 0x35b   :  { %v517_v28 = vmul.f32 1.442695, %v496_v0  ;;  %v2753_v44 = vpop.eup %2168 }
 0x35c   :  { %v1030_v34 = vpop.permute.xlu1 %1029  ;;  %545 = vadd.xlane.f32.xlu0 %v2748_v23  ;;  %v527_v42 = vmul.f32 1.442695, %v501_v22 }
 0x35d   :  { %2176 = vpow2.f32 %v517_v28  ;;  %2074 = vmatmul.mubr.msk.bf16.gmra.mrb[28].mxu1 %vm313_vm1, %v1030_v34  ;;  %v482_v48 = vpop.xlane.xlu0 %481 }
 0x35e   :  { %2178 = vpow2.f32 %v527_v42  ;;  %v502_v52 = vsub.f32 %v2675_v21, %v482_v48  ;;  %v1000_v48 = vld [vmem:[#allocation8 + $0x88] sm:$0xff] }
 0x35f   :  { %v2755_v16 = vpop.eup %2170  ;;  %2180 = vpow2.f32 %v523_v17  ;;  %v2803_v17 = vadd.f32 %v2690_v27, %v1000_v48  ;;  %v1004_v27 = vld [vmem:[#allocation8 + $0xa8] sm:$0xff] }
 0x360   :  { %551 = vadd.xlane.f32.xlu1 %v2755_v16  ;;  %541 = vadd.xlane.f32.xlu0 %v2753_v44  ;;  %v2760_v53 = vpop.eup %2172  ;;  %v529_v12 = vmul.f32 1.442695, %v502_v52  ;;  %v1001_v52 = vld [vmem:[#allocation8 + $0x90] sm:$0xff] }
 0x361   :  { %v616_v62 = vpop.permute.xlu0 %615 }
 0x362   :  { %2182 = vpow2.f32 %v529_v12  ;;  %v2807_v12 = vadd.f32 %v2684_v24, %v1001_v52  ;;  %v1006_v24 = vld [vmem:[#allocation8 + $0xb8] sm:$0xff] }
 0x363   :  { %v2763_v54 = vpop.eup %2174 }
 0x364   :  { %547 = vadd.xlane.f32.xlu1 %v2760_v53 }
 0x365   :  { %v620_v7 = vpop.permute.xlu0 %619 }
 0x367   :  { %v2765_v58 = vpop.eup %2176 }
 0x368   :  { %549 = vadd.xlane.f32.xlu0 %v2765_v58  ;;  %553 = vadd.xlane.f32.xlu1 %v2763_v54  ;;  %v2769_v59 = vpop.eup %2178 }
 0x369   :  { %v2772_v21 = vpop.eup %2180 }
 0x36c   :  { %559 = vadd.xlane.f32.xlu1 %v2769_v59  ;;  %v2775_v60 = vpop.eup %2182 }
 0x370   :  { %555 = vadd.xlane.f32.xlu1 %v2772_v21 }
 0x374   :  { %561 = vadd.xlane.f32.xlu1 %v2775_v60 }
 0x38d   :  { %v478_v63 = vpop.xlane.xlu1 %477 }
 0x38e   :  { %v500_v3 = vsub.f32 %v2696_v31, %v478_v63  ;;  %v1003_v63 = vld [vmem:[#allocation8 + $0xa0] sm:$0xff] }
 0x390   :  { %v525_v4 = vmul.f32 1.442695, %v500_v3  ;;  %v2815_v3 = vadd.f32 %v2694_v30, %v1003_v63  ;;  %v1011_v63 = vld [vmem:[#allocation8 + $0xe0] sm:$0xff] }
 0x391   :  { %v612_v6 = vpop.permute.xlu1 %611 }
 0x392   :  { %2184 = vpow2.f32 %v525_v4  ;;  %1995 = vmatprep.subr.bf16.mxu0 %v612_v6  ;;  %v2819_v4 = vadd.f32 %v2700_v33, %v1004_v27 }
 0x393   :  { %1996 = vmatpush3.bf16.msra.mxu0 %v612_v6  ;;  %v2823_v6 = vadd.f32 %v2698_v32, %v1006_v24 }
 0x395   :  { %v614_v8 = vpop.permute.xlu1 %613 }
 0x396   :  { %1997 = vmatprep.subr.bf16.mxu0 %v614_v8  ;;  %v488_v10 = vpop.xlane.xlu0 %487 }
 0x397   :  { %v505_v49 = vsub.f32 %v2709_v40, %v488_v10  ;;  %1998 = vmatpush3.bf16.msra.mxu0 %v614_v8  ;;  %v1009_v8 = vld [vmem:[#allocation8 + $0xd0] sm:$0xff]  ;;  %v1010_v10 = vld [vmem:[#allocation8 + $0xd8] sm:$0xff] }
 0x398   :  { %1999 = vmatprep.subr.bf16.mxu0 %v616_v62  ;;  %v2837_v32 = vadd.f32 %v2703_v37, %v1009_v8 }
 0x399   :  { %v535_v11 = vmul.f32 1.442695, %v505_v49  ;;  %v618_v14 = vpop.permute.xlu1 %617  ;;  %v2841_v49 = vadd.f32 %v2707_v39, %v1010_v10 }
 0x39a   :  { %v484_v13 = vpop.xlane.xlu0 %483 }
 0x39b   :  { %2186 = vpow2.f32 %v535_v11  ;;  %v503_v57 = vsub.f32 %v2714_v43, %v484_v13  ;;  %2000 = vmatpush3.bf16.msra.mxu0 %v616_v62  ;;  %v1002_v62 = vld [vmem:[#allocation8 + $0x98] sm:$0xff]  ;;  %v1005_v11 = vld [vmem:[#allocation8 + $0xb0] sm:$0xff] }
 0x39c   :  { %v2781_v31 = vpop.eup %2184  ;;  %2001 = vmatprep.subr.bf16.mxu0 %v618_v14  ;;  %v2845_v13 = vadd.f32 %v2692_v29, %v1005_v11  ;;  %v1014_v11 = vld [vmem:[#allocation8 + $0xf8] sm:$0xff] }
 0x39d   :  { %v531_v15 = vmul.f32 1.442695, %v503_v57  ;;  %557 = vadd.xlane.f32.xlu0 %v2781_v31  ;;  %v624_v28 = vpop.permute.xlu1 %623 }
 0x39e   :  { %v490_v61 = vpop.xlane.xlu0 %489 }
 0x39f   :  { %2188 = vpow2.f32 %v531_v15  ;;  %v506_v19 = vsub.f32 %v2717_v47, %v490_v61  ;;  %2002 = vmatpush3.bf16.msra.mxu0 %v618_v14 }
 0x3a0   :  { %2003 = vmatprep.subr.bf16.mxu0 %v620_v7 }
 0x3a1   :  { %v537_v40 = vmul.f32 1.442695, %v506_v19 }
 0x3a2   :  { %v486_v20 = vpop.xlane.xlu0 %485 }
 0x3a3   :  { %2190 = vpow2.f32 %v537_v40  ;;  %v504_v0 = vsub.f32 %v2722_v50, %v486_v20  ;;  %2004 = vmatpush3.bf16.msra.mxu0 %v620_v7  ;;  %v999_v50 = vld [vmem:[#allocation8 + $0x80] sm:$0xff]  ;;  %v1008_v7 = vld [vmem:[#allocation8 + $0xc8] sm:$0xff] }
 0x3a4   :  { %v2796_v9 = vadd.f32 %v2686_v25, %v999_v50  ;;  %v2811_v25 = vadd.f32 %v2688_v26, %v1002_v62  ;;  %v1007_v26 = vld [vmem:[#allocation8 + $0xc0] sm:$0xff]  ;;  %v2833_v33 = vadd.f32 %v2711_v41, %v1008_v7  ;;  %v1013_v62 = vld [vmem:[#allocation8 + $0xf0] sm:$0xff] }
 0x3a5   :  { %v2786_v43 = vpop.eup %2186  ;;  %v533_v5 = vmul.f32 1.442695, %v504_v0  ;;  %v2829_v30 = vadd.f32 %v2705_v38, %v1007_v26 }
 0x3a6   :  { %567 = vadd.xlane.f32.xlu0 %v2786_v43  ;;  %v622_v22 = vpop.permute.xlu0 %621 }
 0x3a7   :  { %2192 = vpow2.f32 %v533_v5  ;;  %2005 = vmatprep.subr.bf16.mxu0 %v622_v22 }
 0x3a8   :  { %2006 = vmatpush3.bf16.msra.mxu0 %v622_v22 }
 0x3a9   :  { %v2789_v34 = vpop.eup %2188  ;;  %2007 = vmatprep.subr.bf16.mxu0 %v624_v28 }
 0x3aa   :  { %563 = vadd.xlane.f32.xlu1 %v2789_v34 }
 0x3ac   :  { %2008 = vmatpush3.bf16.msra.mxu0 %v624_v28 }
 0x3ad   :  { %v2792_v47 = vpop.eup %2190 }
 0x3ae   :  { %569 = vadd.xlane.f32.xlu1 %v2792_v47 }
 0x3b1   :  { %v2798_v42 = vpop.eup %2192 }
 0x3b2   :  { %1192 = vmax.xlane.f32.xlu1 %v2796_v9  ;;  %565 = vadd.xlane.f32.xlu0 %v2798_v42 }
 0x3b6   :  { %1194 = vmax.xlane.f32.xlu1 %v2803_v17 }
 0x3ba   :  { %1196 = vmax.xlane.f32.xlu1 %v2807_v12 }
 0x3be   :  { %1198 = vmax.xlane.f32.xlu1 %v2811_v25 }
 0x3c2   :  { %1200 = vmax.xlane.f32.xlu1 %v2815_v3 }
 0x3c6   :  { %1202 = vmax.xlane.f32.xlu1 %v2819_v4 }
 0x3c8   :  { %625 = vrot.lane.b32.xlu0 %v2562_v1, %s2419_s26 }
 0x3ca   :  { %1206 = vmax.xlane.f32.xlu1 %v2823_v6 }
 0x3ce   :  { %1208 = vmax.xlane.f32.xlu1 %v2829_v30 }
 0x3d2   :  { %1210 = vmax.xlane.f32.xlu1 %v2833_v33 }
 0x3d6   :  { %1212 = vmax.xlane.f32.xlu1 %v2837_v32 }
 0x3da   :  { %1214 = vmax.xlane.f32.xlu1 %v2841_v49 }
 0x3e1   :  { %v544_v38 = vpop.xlane.xlu0 %543 }
 0x3e2   :  { %2194 = vrcp.f32 %v544_v38 }
 0x3e5   :  { %v540_v41 = vpop.xlane.xlu0 %539 }
 0x3e7   :  { %1204 = vmax.xlane.f32.xlu0 %v2845_v13 }
 0x3e9   :  { %v546_v14 = vpop.xlane.xlu0 %545 }
 0x3ea   :  { %2196 = vrcp.f32 %v546_v14 }
 0x3eb   :  { %2198 = vrcp.f32 %v540_v41 }
 0x3ec   :  { %v2195_v57 = vpop.eup %2194 }
 0x3ed   :  { %v542_v37 = vpop.xlane.xlu0 %541  ;;  %v589_v39 = vmul.f32 %v2195_v57, %v2739_v51  ;;  %v552_v22 = vpop.xlane.xlu1 %551 }
 0x3ee   :  { %2200 = vrcp.f32 %v542_v37 }
 0x3f1   :  { %v548_v28 = vpop.xlane.xlu1 %547 }
 0x3f4   :  { %v2197_v15 = vpop.eup %2196 }
 0x3f5   :  { %v590_v61 = vmul.f32 %v2197_v15, %v2748_v23  ;;  %v2199_v19 = vpop.eup %2198  ;;  %v554_v50 = vpop.xlane.xlu1 %553 }
 0x3f6   :  { %v587_v29 = vmul.f32 %v2199_v19, %v2743_v18  ;;  %v550_v24 = vpop.xlane.xlu0 %549 }
 0x3f7   :  { %v604_v40 = vpack.c.bf16 %v590_v61, %v589_v39  ;;  %2202 = vrcp.f32 %v550_v24 }
 0x3f8   :  { %v2201_v20 = vpop.eup %2200  ;;  %2204 = vrcp.f32 %v548_v28 }
 0x3f9   :  { %v588_v0 = vmul.f32 %v2201_v20, %v2753_v44  ;;  %v560_v48 = vpop.xlane.xlu1 %559  ;;  %v1012_v44 = vld [vmem:[#allocation8 + $0xe8] sm:$0xff]  ;;  %2206 = vrcp.f32 %v554_v50  ;;  %v2160_v20 = vld [vmem:[#allocation9] sm:$0xff]  }
 0x3fa   :  { %2208 = vrcp.f32 %v552_v22 }
 0x3fb   :  { %v603_v5 = vpack.c.bf16 %v588_v0, %v587_v29 }
 0x3fd   :  { %2011 = vmatprep.mubr.bf16.mxu0 %v603_v5  ;;  %v556_v52 = vpop.xlane.xlu1 %555 }
 0x401   :  { %v562_v18 = vpop.xlane.xlu1 %561  ;;  %v2203_v39 = vpop.eup %2202 }
 0x402   :  { %v2205_v61 = vpop.eup %2204  ;;  %v592_v0 = vmul.f32 %v2203_v39, %v2765_v58 }
 0x403   :  { %v591_v5 = vmul.f32 %v2205_v61, %v2760_v53  ;;  %v2207_v28 = vpop.eup %2206 }
 0x404   :  { %v2209_v50 = vpop.eup %2208  ;;  %v594_v58 = vmul.f32 %v2207_v28, %v2763_v54 }
 0x405   :  { %v605_v22 = vpack.c.bf16 %v592_v0, %v591_v5  ;;  %v593_v53 = vmul.f32 %v2209_v50, %v2755_v16 }
 0x42a   :  { %v558_v38 = vpop.xlane.xlu0 %557 }
 0x42b   :  { %2210 = vrcp.f32 %v558_v38 }
 0x42c   :  { %2212 = vrcp.f32 %v556_v52 }
 0x42d   :  { %2214 = vrcp.f32 %v562_v18 }
 0x430   :  { %v2075_v27 = vpop.f32.mrb[28].mxu1 }
 0x431   :  { %v2852_v51 = vadd.f32 %v2075_v27, %v1013_v62  ;;  %v1177_v23 = vpop.f32.mrb[29].mxu1 }
 0x432   :  { %v2854_v26 = vadd.f32 %v1177_v23, %v1011_v63  ;;  %v2076_v7 = vpop.f32.mrb[30].mxu1 }
 0x433   :  { %v1180_v8 = vpop.f32.mrb[31].mxu1  ;;  %1220 = vmax.xlane.f32.xlu0 %v2852_v51  ;;  %v2861_v14 = vadd.f32 %v2076_v7, %v1014_v11  ;;  %v568_v37 = vpop.xlane.xlu0 %567 }
 0x434   :  { %1216 = vmax.xlane.f32.xlu1 %v2854_v26  ;;  %v2858_v10 = vadd.f32 %v1180_v8, %v1012_v44 }
 0x435   :  { %v2211_v62 = vpop.eup %2210 }
 0x436   :  { %v2213_v63 = vpop.eup %2212  ;;  %v596_v27 = vmul.f32 %v2211_v62, %v2781_v31 }
 0x437   :  { %v564_v41 = vpop.xlane.xlu1 %563  ;;  %v2215_v23 = vpop.eup %2214 }
 0x438   :  { %1218 = vmax.xlane.f32.xlu1 %v2858_v10 }
 0x43b   :  { %v570_v57 = vpop.xlane.xlu1 %569 }
 0x43c   :  { %1222 = vmax.xlane.f32.xlu1 %v2861_v14 }
 0x43f   :  { %v566_v15 = vpop.xlane.xlu0 %565  ;;  %v2864_v19 = vpop.xlane.xlu1 %1192 }
 0x440   :  { %2216 = vrcp.f32 %v566_v15 }
 0x441   :  { %2218 = vrcp.f32 %v560_v48  ;;  %v606_v48 = vpack.c.bf16 %v594_v58, %v593_v53 }
 0x442   :  { %2220 = vrcp.f32 %v564_v41 }
 0x443   :  { %v626_v29 = vpop.permute.xlu0 %625  ;;  %v1195_v52 = vpop.xlane.xlu1 %1194  ;;  %2222 = vrcp.f32 %v570_v57 }
 0x444   :  { %2009 = vmatprep.subr.bf16.mxu0 %v626_v29  ;;  %2224 = vrcp.f32 %v568_v37 }
 0x445   :  { %2010 = vmatpush3.bf16.msra.mxu0 %v626_v29 }
 0x446   :  { %2027 = vmatprep.subr.bf16.mxu0 %v2160_v20 }
 0x448   :  { %2012 = vmatmul.mubr.bf16.vlgmr.msra.gmra.mrb[16].mxu0 %v604_v40  ;;  %v1197_v40 = vpop.xlane.xlu1 %1196 }
 0x449   :  { %1344 = vrot.lane.b32.xlu0 %v2538_v36, %s2420_s27  ;;  %2015 = vmatprep.mubr.bf16.mxu0 %v605_v22  ;;  %v595_v36 = vmul.f32 %v2213_v63, %v2772_v21 }
 0x44a   :  { %2028 = vmatpush3.bf16.msra.mxu0 %v2160_v20  ;;  %v2217_v54 = vpop.eup %2216 }
 0x44b   :  { %v607_v24 = vpack.c.bf16 %v596_v27, %v595_v36  ;;  %v2219_v7 = vpop.eup %2218  ;;  %v600_v16 = vmul.f32 %v2217_v54, %v2798_v42 }
 0x44c   :  { %v1199_v31 = vpop.xlane.xlu1 %1198  ;;  %v597_v21 = vmul.f32 %v2219_v7, %v2769_v59  ;;  %v1226_v59 = vsub.f32 %v2807_v12, %v1197_v40 }
 0x44d   :  { %1346 = vrot.lane.b32.xlu1 %v2536_v35, %s2420_s27  ;;  %1348 = vrot.lane.b32.xlu0 %v2548_v46, %s2420_s27  ;;  %v2221_v35 = vpop.eup %2220  ;;  %v598_v46 = vmul.f32 %v2215_v23, %v2775_v60  ;;  %v1227_v39 = vsub.f32 %v2811_v25, %v1199_v31 }
 0x44e   :  { %v599_v18 = vmul.f32 %v2221_v35, %v2789_v34  ;;  %v2223_v44 = vpop.eup %2222  ;;  %v1244_v34 = vmul.f32 1.442695, %v1226_v59 }
 0x44f   :  { %v608_v8 = vpack.c.bf16 %v598_v46, %v597_v21  ;;  %v2225_v38 = vpop.eup %2224  ;;  %v602_v11 = vmul.f32 %v2223_v44, %v2792_v47  ;;  %v1225_v47 = vsub.f32 %v2803_v17, %v1195_v52  ;;  %v1246_v61 = vmul.f32 1.442695, %v1227_v39 }
 0x450   :  { %2016 = vmatmul.mubr.bf16.gmra.mrb[20].mxu0 %v606_v48  ;;  %v601_v60 = vmul.f32 %v2225_v38, %v2786_v43  ;;  %2226 = vpow2.f32 %v1244_v34 }
 0x451   :  { %1352 = vrot.lane.b32.xlu1 %v2556_v56, %s2420_s27  ;;  %1350 = vrot.lane.b32.xlu0 %v2546_v45, %s2420_s27  ;;  %v609_v56 = vpack.c.bf16 %v600_v16, %v599_v18  ;;  %v1201_v45 = vpop.xlane.xlu1 %1200  ;;  %v1242_v0 = vmul.f32 1.442695, %v1225_v47 }
 0x452   :  { %2019 = vmatprep.mubr.bf16.mxu0 %v607_v24  ;;  %v610_v42 = vpack.c.bf16 %v602_v11, %v601_v60  ;;  %v1228_v29 = vsub.f32 %v2815_v3, %v1201_v45 }
 0x454   :  { %v1248_v22 = vmul.f32 1.442695, %v1228_v29 }
 0x455   :  { %1354 = vrot.lane.b32.xlu1 %v2554_v55, %s2420_s27  ;;  %v1203_v41 = vpop.xlane.xlu1 %1202  ;;  %v1224_v55 = vsub.f32 %v2796_v9, %v2864_v19 }
 0x456   :  { %v1229_v9 = vsub.f32 %v2819_v4, %v1203_v41 }
 0x457   :  { %v1240_v15 = vmul.f32 1.442695, %v1224_v55 }
 0x458   :  { %2020 = vmatmul.mubr.bf16.gmra.mrb[24].mxu0 %v608_v8  ;;  %v1250_v17 = vmul.f32 1.442695, %v1229_v9 }
 0x459   :  { %2023 = vmatprep.mubr.bf16.mxu0 %v609_v56  ;;  %v1207_v37 = vpop.xlane.xlu1 %1206  ;;  %2228 = vpow2.f32 %v1240_v15 }
 0x45a   :  { %2230 = vpow2.f32 %v1246_v61  ;;  %v2898_v5 = vpop.eup %2226  ;;  %v1231_v25 = vsub.f32 %v2823_v6, %v1207_v37 }
 0x45d   :  { %v1209_v57 = vpop.xlane.xlu1 %1208 }
 0x45e   :  { %v1232_v3 = vsub.f32 %v2829_v30, %v1209_v57 }
 0x460   :  { %2024 = vmatmul.mubr.bf16.gmra.mrb[28].mxu0 %v610_v42  ;;  %v1256_v52 = vmul.f32 1.442695, %v1232_v3 }
 0x461   :  { %v1211_v43 = vpop.xlane.xlu1 %1210 }
 0x463   :  { %v2903_v50 = vpop.eup %2228 }
 0x464   :  { %v2907_v58 = vpop.eup %2230 }
 0x465   :  { %v1213_v28 = vpop.xlane.xlu1 %1212 }
 0x466   :  { %v1234_v4 = vsub.f32 %v2837_v32, %v1213_v28  ;;  %v1233_v32 = vsub.f32 %v2833_v33, %v1211_v43 }
 0x468   :  { %v1260_v6 = vmul.f32 1.442695, %v1234_v4 }
 0x469   :  { %v1215_v62 = vpop.xlane.xlu1 %1214 }
 0x46a   :  { %v1235_v63 = vsub.f32 %v2841_v49, %v1215_v62  ;;  %v1258_v49 = vmul.f32 1.442695, %v1233_v32 }
 0x46c   :  { %v1262_v27 = vmul.f32 1.442695, %v1235_v63 }
 0x474   :  { %v1205_v20 = vpop.xlane.xlu0 %1204 }
 0x475   :  { %v1230_v12 = vsub.f32 %v2845_v13, %v1205_v20  ;;  %v1254_v13 = vmul.f32 1.442695, %v1231_v25 }
 0x477   :  { %v1252_v19 = vmul.f32 1.442695, %v1230_v12 }
 0x479   :  { %2232 = vpow2.f32 %v1252_v19  ;;  %1276 = vadd.xlane.f32.xlu1 %v2898_v5 }
 0x47a   :  { %2234 = vpow2.f32 %v1242_v0 }
 0x47b   :  { %2236 = vpow2.f32 %v1248_v22 }
 0x47c   :  { %2238 = vpow2.f32 %v1250_v17 }
 0x47d   :  { %1272 = vadd.xlane.f32.xlu1 %v2903_v50  ;;  %2240 = vpow2.f32 %v1254_v13 }
 0x47e   :  { %2242 = vpow2.f32 %v1256_v52 }
 0x47f   :  { %2244 = vpow2.f32 %v1260_v6 }
 0x480   :  { %2246 = vpow2.f32 %v1262_v27 }
 0x481   :  { %1278 = vadd.xlane.f32.xlu1 %v2907_v58  ;;  %2248 = vpow2.f32 %v1258_v49 }
 0x483   :  { %v2911_v30 = vpop.eup %2232 }
 0x484   :  { %v2913_v53 = vpop.eup %2234  ;;  %1284 = vadd.xlane.f32.xlu0 %v2911_v30 }
 0x485   :  { %1274 = vadd.xlane.f32.xlu1 %v2913_v53  ;;  %v2918_v40 = vpop.eup %2236 }
 0x486   :  { %v2920_v48 = vpop.eup %2238 }
 0x487   :  { %v2924_v36 = vpop.eup %2240 }
 0x488   :  { %1280 = vadd.xlane.f32.xlu0 %v2918_v40  ;;  %v2926_v23 = vpop.eup %2242 }
 0x489   :  { %1282 = vadd.xlane.f32.xlu1 %v2920_v48  ;;  %v2930_v33 = vpop.eup %2244 }
 0x48a   :  { %v2933_v54 = vpop.eup %2246 }
 0x48b   :  { %v2936_v24 = vpop.eup %2248 }
 0x48c   :  { %1286 = vadd.xlane.f32.xlu0 %v2924_v36 }
 0x48d   :  { %1288 = vadd.xlane.f32.xlu1 %v2926_v23 }
 0x490   :  { %1292 = vadd.xlane.f32.xlu0 %v2930_v33 }
 0x494   :  { %1294 = vadd.xlane.f32.xlu0 %v2933_v54 }
 0x498   :  { %1290 = vadd.xlane.f32.xlu0 %v2936_v24 }
 0x4ae   :  { %1356 = vrot.lane.b32.xlu0 %v2564_v2, %s2420_s27 }
 0x4c0   :  { %v1221_v7 = vpop.xlane.xlu0 %1220 }
 0x4c1   :  { %v1238_v35 = vsub.f32 %v2852_v51, %v1221_v7  ;;  %v1217_v46 = vpop.xlane.xlu1 %1216 }
 0x4c2   :  { %v1236_v16 = vsub.f32 %v2854_v26, %v1217_v46 }
 0x4c3   :  { %v1268_v31 = vmul.f32 1.442695, %v1238_v35 }
 0x4c4   :  { %v2943_v21 = vpop.permute.xlu0 %1344  ;;  %v1264_v18 = vmul.f32 1.442695, %v1236_v16 }
 0x4c5   :  { %2250 = vpow2.f32 %v1268_v31  ;;  %v1219_v8 = vpop.xlane.xlu1 %1218  ;;  %2077 = vmatprep.subr.bf16.mxu0 %v2943_v21 }
 0x4c6   :  { %v1237_v44 = vsub.f32 %v2858_v10, %v1219_v8  ;;  %2252 = vpow2.f32 %v1264_v18 }
 0x4c8   :  { %v1266_v56 = vmul.f32 1.442695, %v1237_v44  ;;  %v2982_v42 = vpop.permute.xlu0 %1348 }
 0x4c9   :  { %v1223_v38 = vpop.xlane.xlu1 %1222 }
 0x4ca   :  { %2254 = vpow2.f32 %v1266_v56  ;;  %v1239_v2 = vsub.f32 %v2861_v14, %v1223_v38  ;;  %v2421_v14 = vmov 0.0  }
 0x4cb   :  { %251 = vst.msk [vmem:[#allocation2 + $0x10] sm:$0xff] %vm127_vm0, %v2421_v14  ;;  %249 = vst.msk [vmem:[#allocation2] sm:$0xff] %vm127_vm0, %v2421_v14 }
 0x4cc   :  { %v1270_v51 = vmul.f32 1.442695, %v1239_v2  ;;  %250 = vst.msk [vmem:[#allocation2 + $0x8] sm:$0xff] %vm127_vm0, %v2421_v14  ;;  %252 = vst.msk [vmem:[#allocation2 + $0x18] sm:$0xff] %vm127_vm0, %v2421_v14  ;;  %v2986_v59 = vpop.permute.xlu0 %1350 }
 0x4cd   :  { %253 = vst.msk [vmem:[#allocation2 + $0x20] sm:$0xff] %vm127_vm0, %v2421_v14  ;;  %254 = vst.msk [vmem:[#allocation2 + $0x28] sm:$0xff] %vm127_vm0, %v2421_v14 }
 0x4ce   :  { %2256 = vpow2.f32 %v1270_v51  ;;  %255 = vst.msk [vmem:[#allocation2 + $0x30] sm:$0xff] %vm127_vm0, %v2421_v14  ;;  %256 = vst.msk [vmem:[#allocation2 + $0x38] sm:$0xff] %vm127_vm0, %v2421_v14 }
 0x4cf   :  { %v2948_v45 = vpop.eup %2250  ;;  %257 = vst.msk [vmem:[#allocation2 + $0x40] sm:$0xff] %vm127_vm0, %v2421_v14  ;;  %258 = vst.msk [vmem:[#allocation2 + $0x48] sm:$0xff] %vm127_vm0, %v2421_v14 }
 0x4d0   :  { %1300 = vadd.xlane.f32.xlu1 %v2948_v45  ;;  %v2951_v26 = vpop.eup %2252  ;;  %259 = vst.msk [vmem:[#allocation2 + $0x50] sm:$0xff] %vm127_vm0, %v2421_v14  ;;  %260 = vst.msk [vmem:[#allocation2 + $0x58] sm:$0xff] %vm127_vm0, %v2421_v14 }
 0x4d1   :  { %261 = vst.msk [vmem:[#allocation2 + $0x60] sm:$0xff] %vm127_vm0, %v2421_v14  ;;  %262 = vst.msk [vmem:[#allocation2 + $0x68] sm:$0xff] %vm127_vm0, %v2421_v14 }
 0x4d2   :  { %263 = vst.msk [vmem:[#allocation2 + $0x70] sm:$0xff] %vm127_vm0, %v2421_v14  ;;  %264 = vst.msk [vmem:[#allocation2 + $0x78] sm:$0xff] %vm127_vm0, %v2421_v14 }
 0x4d4   :  { %v2953_v11 = vpop.eup %2254  ;;  %1296 = vadd.xlane.f32.xlu1 %v2951_v26 }
 0x4d5   :  { %1298 = vadd.xlane.f32.xlu0 %v2953_v11 }
 0x4d8   :  { %v2957_v10 = vpop.eup %2256 }
 0x4d9   :  { %1302 = vadd.xlane.f32.xlu0 %v2957_v10 }
 0x4e5   :  { %1358 = vrot.lane.b32.xlu1 %v2562_v1, %s2420_s27  ;;  %v2978_v1 = vpop.permute.xlu1 %1346 }
 0x4e9   :  { %v2980_v60 = vpop.permute.xlu1 %1352 }
 0x4ed   :  { %v2984_v41 = vpop.permute.xlu1 %1354 }
 0x506   :  { %v2988_v55 = vpop.xlane.xlu1 %1276 }
 0x50a   :  { %v2992_v22 = vpop.xlane.xlu1 %1272 }
 0x50e   :  { %v2996_v14 = vpop.xlane.xlu1 %1278 }
 0x511   :  { %v2990_v15 = vpop.xlane.xlu0 %1284 }
 0x515   :  { %v2994_v3 = vpop.xlane.xlu0 %1280 }
 0x51b   :  { %v2013_v37 = vpop.f32.mrb[16].mxu0 }
 0x51c   :  { %v734_v34 = vadd.f32 3.0, %v2013_v37  ;;  %v669_v57 = vpop.f32.mrb[17].mxu0 }
 0x51d   :  { %v732_v39 = vadd.f32 3.0, %v669_v57  ;;  %v2014_v47 = vpop.f32.mrb[18].mxu0 }
 0x51e   :  { %v750_v61 = vmax.f32 %v734_v34, 0.0  ;;  %v735_v43 = vadd.f32 3.0, %v2014_v47  ;;  %v672_v20 = vpop.f32.mrb[19].mxu0 }
 0x51f   :  { %v748_v29 = vmax.f32 %v732_v39, 0.0  ;;  %v733_v12 = vadd.f32 3.0, %v672_v20 }
 0x520   :  { %v766_v0 = vmin.f32 %v750_v61, 6.0  ;;  %v751_v9 = vmax.f32 %v735_v43, 0.0 }
 0x521   :  { %v764_v19 = vmin.f32 %v748_v29, 6.0  ;;  %v749_v28 = vmax.f32 %v733_v12, 0.0 }
 0x522   :  { %v782_v25 = vmul.f32 %v2013_v37, %v766_v0  ;;  %v767_v17 = vmin.f32 %v751_v9, 6.0  ;;  %v2998_v37 = vpop.xlane.xlu0 %1286 }
 0x523   :  { %v780_v13 = vmul.f32 %v764_v19, %v669_v57  ;;  %v765_v4 = vmin.f32 %v749_v28, 6.0  ;;  %v2017_v52 = vpop.f32.mrb[20].mxu0 }
 0x524   :  { %v783_v62 = vmul.f32 %v2014_v47, %v767_v17  ;;  %v738_v6 = vadd.f32 3.0, %v2017_v52  ;;  %v685_v63 = vpop.f32.mrb[21].mxu0  ;;  %v798_v32 = vmul.f32 0.16666667, %v782_v25 }
 0x525   :  { %v781_v27 = vmul.f32 %v765_v4, %v672_v20  ;;  %v736_v49 = vadd.f32 3.0, %v685_v63  ;;  %v2018_v7 = vpop.f32.mrb[22].mxu0  ;;  %v796_v18 = vmul.f32 0.16666667, %v780_v13 }
 0x526   :  { %v799_v35 = vmul.f32 0.16666667, %v783_v62  ;;  %v754_v46 = vmax.f32 %v738_v6, 0.0  ;;  %v739_v16 = vadd.f32 3.0, %v2018_v7  ;;  %v688_v31 = vpop.f32.mrb[23].mxu0  ;;  %v1275_v6 = vpop.xlane.xlu1 %1274 }
 0x527   :  { %v797_v8 = vmul.f32 0.16666667, %v781_v27  ;;  %v752_v44 = vmax.f32 %v736_v49, 0.0  ;;  %v737_v56 = vadd.f32 3.0, %v688_v31  ;;  %2258 = vrcp.f32 %v1275_v6 }
 0x528   :  { %v813_v38 = vpack.c.bf16 %v799_v35, %v798_v32  ;;  %v770_v2 = vmin.f32 %v754_v46, 6.0  ;;  %v755_v51 = vmax.f32 %v739_v16, 0.0  ;;  %2260 = vrcp.f32 %v2992_v22 }
 0x529   :  { %v812_v34 = vpack.c.bf16 %v797_v8, %v796_v18  ;;  %v768_v57 = vmin.f32 %v752_v44, 6.0  ;;  %v753_v39 = vmax.f32 %v737_v56, 0.0  ;;  %2262 = vrcp.f32 %v2996_v14 }
 0x52a   :  { %v786_v47 = vmul.f32 %v2017_v52, %v770_v2  ;;  %v771_v61 = vmin.f32 %v755_v51, 6.0  ;;  %2264 = vrcp.f32 %v2994_v3 }
 0x52b   :  { %v784_v43 = vmul.f32 %v768_v57, %v685_v63  ;;  %v769_v20 = vmin.f32 %v753_v39, 6.0  ;;  %v2021_v29 = vpop.f32.mrb[24].mxu0  ;;  %2029 = vmatprep.mubr.msk.bf16.mxu0 %vm844_vm2, %v812_v34  ;;  %v3004_v63 = vpop.xlane.xlu0 %1292 }
 0x52c   :  { %v787_v12 = vmul.f32 %v2018_v7, %v771_v61  ;;  %v742_v0 = vadd.f32 3.0, %v2021_v29  ;;  %v701_v9 = vpop.f32.mrb[25].mxu0  ;;  %2030 = vmatmul.mubr.msk.bf16.vlgmr.msra.gmra.mrb[32].mxu0 %vm844_vm2, %v813_v38  ;;  %v802_v19 = vmul.f32 0.16666667, %v786_v47 }
 0x52d   :  { %v785_v28 = vmul.f32 %v769_v20, %v688_v31  ;;  %v740_v25 = vadd.f32 3.0, %v701_v9  ;;  %2078 = vmatpush3.bf16.msra.mxu0 %v2943_v21  ;;  %v2022_v17 = vpop.f32.mrb[26].mxu0  ;;  %v800_v32 = vmul.f32 0.16666667, %v784_v43 }
 0x52e   :  { %v803_v13 = vmul.f32 0.16666667, %v787_v12  ;;  %v758_v4 = vmax.f32 %v742_v0, 0.0  ;;  %v743_v52 = vadd.f32 3.0, %v2022_v17  ;;  %2079 = vmatprep.subr.bf16.mxu0 %v2978_v1  ;;  %v704_v62 = vpop.f32.mrb[27].mxu0 }
 0x52f   :  { %v801_v27 = vmul.f32 0.16666667, %v785_v28  ;;  %v756_v49 = vmax.f32 %v740_v25, 0.0  ;;  %v741_v7 = vadd.f32 3.0, %v704_v62  ;;  %v3011_v39 = vpop.xlane.xlu0 %1294 }
 0x530   :  { %v815_v35 = vpack.c.bf16 %v803_v13, %v802_v19  ;;  %v774_v46 = vmin.f32 %v758_v4, 6.0  ;;  %v759_v16 = vmax.f32 %v743_v52, 0.0 }
 0x531   :  { %v814_v31 = vpack.c.bf16 %v801_v27, %v800_v32  ;;  %v772_v18 = vmin.f32 %v756_v49, 6.0  ;;  %v757_v21 = vmax.f32 %v741_v7, 0.0  ;;  %2080 = vmatpush3.bf16.msra.mxu0 %v2978_v1  ;;  %v2259_v7 = vpop.eup %2258 }
 0x532   :  { %v790_v8 = vmul.f32 %v2021_v29, %v774_v46  ;;  %v775_v44 = vmin.f32 %v759_v16, 6.0  ;;  %2081 = vmatprep.subr.bf16.mxu0 %v2982_v42  ;;  %v2261_v16 = vpop.eup %2260 }
 0x533   :  { %v788_v56 = vmul.f32 %v772_v18, %v701_v9  ;;  %v773_v38 = vmin.f32 %v757_v21, 6.0  ;;  %v2025_v2 = vpop.f32.mrb[28].mxu0  ;;  %2033 = vmatprep.mubr.msk.bf16.mxu0 %vm844_vm2, %v814_v31  ;;  %v1291_v32 = vpop.xlane.xlu0 %1290 }
 0x534   :  { %v791_v51 = vmul.f32 %v2022_v17, %v775_v44  ;;  %v746_v34 = vadd.f32 3.0, %v2025_v2  ;;  %v717_v57 = vpop.f32.mrb[29].mxu0  ;;  %2034 = vmatmul.mubr.msk.bf16.gmra.mrb[36].mxu0 %vm844_vm2, %v815_v35  ;;  %v806_v1 = vmul.f32 0.16666667, %v790_v8  ;;  %v1321_v8 = vmul.f32 %v2259_v7, %v2913_v53 }
 0x535   :  { %v789_v47 = vmul.f32 %v773_v38, %v704_v62  ;;  %v744_v61 = vadd.f32 3.0, %v717_v57  ;;  %2082 = vmatpush3.bf16.msra.mxu0 %v2982_v42  ;;  %v2026_v43 = vpop.f32.mrb[30].mxu0  ;;  %v804_v22 = vmul.f32 0.16666667, %v788_v56 }
 0x536   :  { %v807_v20 = vmul.f32 0.16666667, %v791_v51  ;;  %v762_v29 = vmax.f32 %v746_v34, 0.0  ;;  %v747_v12 = vadd.f32 3.0, %v2026_v43  ;;  %2083 = vmatprep.subr.bf16.mxu0 %v2986_v59  ;;  %v720_v0 = vpop.f32.mrb[31].mxu0  ;;  %v1283_v51 = vpop.xlane.xlu1 %1282 }
 0x537   :  { %v805_v9 = vmul.f32 0.16666667, %v789_v47  ;;  %v760_v19 = vmax.f32 %v744_v61, 0.0  ;;  %v745_v28 = vadd.f32 3.0, %v720_v0  ;;  %v1357_v56 = vpop.permute.xlu0 %1356  ;;  %2266 = vrcp.f32 %v1283_v51 }
 0x538   :  { %v817_v25 = vpack.c.bf16 %v807_v20, %v806_v1  ;;  %v778_v17 = vmin.f32 %v762_v29, 6.0  ;;  %v763_v13 = vmax.f32 %v747_v12, 0.0  ;;  %2268 = vrcp.f32 %v2988_v55 }
 0x539   :  { %v816_v4 = vpack.c.bf16 %v805_v9, %v804_v22  ;;  %v776_v52 = vmin.f32 %v760_v19, 6.0  ;;  %v761_v62 = vmax.f32 %v745_v28, 0.0  ;;  %2084 = vmatpush3.bf16.msra.mxu0 %v2986_v59  ;;  %2270 = vrcp.f32 %v2998_v37 }
 0x53a   :  { %v794_v42 = vmul.f32 %v2025_v2, %v778_v17  ;;  %v779_v6 = vmin.f32 %v763_v13, 6.0  ;;  %2085 = vmatprep.subr.bf16.mxu0 %v2980_v60  ;;  %v1320_v2 = vmul.f32 %v2261_v16, %v2903_v50  ;;  %v1289_v53 = vpop.xlane.xlu1 %1288  ;;  %v2263_v50 = vpop.eup %2262  ;;  %2272 = vrcp.f32 %v1291_v32 }
 0x53b   :  { %v792_v27 = vmul.f32 %v776_v52, %v717_v57  ;;  %v777_v49 = vmin.f32 %v761_v62, 6.0  ;;  %2037 = vmatprep.mubr.msk.bf16.mxu0 %vm844_vm2, %v816_v4  ;;  %v2265_v34 = vpop.eup %2264  ;;  %2274 = vrcp.f32 %v2990_v15  ;;  %v1323_v14 = vmul.f32 %v2263_v50, %v2907_v58  ;;  %v830_v50 = vld [vmem:[#allocation2 + $0x50] sm:$0xff] }
 0x53c   :  { %v795_v35 = vmul.f32 %v2026_v43, %v779_v6  ;;  %2038 = vmatmul.mubr.msk.bf16.gmra.mrb[40].mxu0 %vm844_vm2, %v817_v25  ;;  %v810_v31 = vmul.f32 0.16666667, %v794_v42  ;;  %2276 = vrcp.f32 %v1289_v53  ;;  %v1324_v43 = vmul.f32 %v2265_v34, %v2918_v40  ;;  %v828_v34 = vld [vmem:[#allocation2 + $0x40] sm:$0xff] }
 0x53d   :  { %v793_v46 = vmul.f32 %v777_v49, %v720_v0  ;;  %2086 = vmatpush3.bf16.msra.mxu0 %v2980_v60  ;;  %v808_v59 = vmul.f32 0.16666667, %v792_v27  ;;  %v1336_v60 = vpack.c.bf16 %v1321_v8, %v1320_v2  ;;  %2278 = vrcp.f32 %v3011_v39  ;;  %v2161_v27 = vld [vmem:[#allocation9 + $0x8] sm:$0xff]  }
 0x53e   :  { %v811_v18 = vmul.f32 0.16666667, %v795_v35  ;;  %2087 = vmatprep.subr.bf16.mxu0 %v2984_v41  ;;  %v823_v49 = vld [vmem:[#allocation2 + $0x18] sm:$0xff]  ;;  %v821_v35 = vld [vmem:[#allocation2 + $0x8] sm:$0xff] }
 0x53f   :  { %v809_v21 = vmul.f32 0.16666667, %v793_v46  ;;  %v827_v8 = vld [vmem:[#allocation2 + $0x38] sm:$0xff] }
 0x540   :  { %v819_v44 = vpack.c.bf16 %v811_v18, %v810_v31  ;;  %v826_v18 = vld [vmem:[#allocation2 + $0x30] sm:$0xff] }
 0x541   :  { %v818_v38 = vpack.c.bf16 %v809_v21, %v808_v59  ;;  %2088 = vmatpush3.bf16.msra.mxu0 %v2984_v41  ;;  %v2267_v1 = vpop.eup %2266  ;;  %v824_v59 = vld [vmem:[#allocation2 + $0x20] sm:$0xff] }
 0x542   :  { %2089 = vmatprep.subr.bf16.mxu0 %v1357_v56  ;;  %v2269_v47 = vpop.eup %2268  ;;  %v1325_v55 = vmul.f32 %v2267_v1, %v2920_v48  ;;  %v831_v1 = vld [vmem:[#allocation2 + $0x58] sm:$0xff] }
 0x543   :  { %2041 = vmatprep.mubr.msk.bf16.mxu0 %vm844_vm2, %v818_v38  ;;  %v1322_v20 = vmul.f32 %v2269_v47, %v2898_v5  ;;  %v2271_v37 = vpop.eup %2270  ;;  %v825_v38 = vld [vmem:[#allocation2 + $0x28] sm:$0xff] }
 0x544   :  { %2042 = vmatmul.mubr.msk.bf16.gmra.mrb[44].mxu0 %vm844_vm2, %v819_v44  ;;  %v1338_v29 = vpack.c.bf16 %v1325_v55, %v1324_v43  ;;  %v2273_v58 = vpop.eup %2272  ;;  %v1327_v48 = vmul.f32 %v2271_v37, %v2924_v36  ;;  %v834_v37 = vld [vmem:[#allocation2 + $0x70] sm:$0xff] }
 0x545   :  { %2090 = vmatpush3.bf16.msra.mxu0 %v1357_v56  ;;  %2093 = vmatprep.mubr.bf16.mxu0 %v1336_v60  ;;  %v1337_v15 = vpack.c.bf16 %v1323_v14, %v1322_v20  ;;  %v2275_v12 = vpop.eup %2274  ;;  %v1329_v5 = vmul.f32 %v2273_v58, %v2936_v24 }
 0x546   :  { %v2277_v40 = vpop.eup %2276  ;;  %v1326_v39 = vmul.f32 %v2275_v12, %v2911_v30  ;;  %v835_v12 = vld [vmem:[#allocation2 + $0x78] sm:$0xff] }
 0x547   :  { %v1328_v22 = vmul.f32 %v2277_v40, %v2926_v23  ;;  %v2279_v9 = vpop.eup %2278 }
 0x548   :  { %v1339_v19 = vpack.c.bf16 %v1327_v48, %v1326_v39  ;;  %v1331_v13 = vmul.f32 %v2279_v9, %v2933_v54  ;;  %v822_v54 = vld [vmem:[#allocation2 + $0x10] sm:$0xff]  ;;  %v833_v48 = vld [vmem:[#allocation2 + $0x68] sm:$0xff] }
 0x55d   :  { %v1301_v41 = vpop.xlane.xlu1 %1300 }
 0x561   :  { %v1297_v57 = vpop.xlane.xlu1 %1296 }
 0x562   :  { %v1299_v61 = vpop.xlane.xlu0 %1298  ;;  %2280 = vrcp.f32 %v1297_v57 }
 0x563   :  { %2282 = vrcp.f32 %v1299_v61  ;;  %v829_v61 = vld [vmem:[#allocation2 + $0x48] sm:$0xff] }
 0x564   :  { %2284 = vrcp.f32 %v3004_v63  ;;  %v1340_v63 = vpack.c.bf16 %v1329_v5, %v1328_v22 }
 0x565   :  { %v1359_v3 = vpop.permute.xlu1 %1358 }
 0x566   :  { %2091 = vmatprep.subr.bf16.mxu0 %v1359_v3  ;;  %v1303_v0 = vpop.xlane.xlu0 %1302 }
 0x567   :  { %2092 = vmatpush3.bf16.msra.mxu0 %v1359_v3  ;;  %2286 = vrcp.f32 %v1303_v0 }
 0x568   :  { %2288 = vrcp.f32 %v1301_v41  ;;  %2109 = vmatprep.subr.bf16.mxu0 %v2161_v27 }
 0x56a   :  { %2094 = vmatmul.mubr.bf16.vlgmr.msra.gmra.mrb[48].mxu0 %v1337_v15 }
 0x56b   :  { %2097 = vmatprep.mubr.bf16.mxu0 %v1338_v29  ;;  %2110 = vmatpush3.bf16.msra.mxu0 %v2161_v27  ;;  %v832_v29 = vld [vmem:[#allocation2 + $0x60] sm:$0xff] }
 0x56c   :  { %v2281_v28 = vpop.eup %2280 }
 0x56d   :  { %v2283_v25 = vpop.eup %2282  ;;  %v1332_v36 = vmul.f32 %v2281_v28, %v2951_v26  ;;  %v820_v26 = vld [vmem:[#allocation2] sm:$0xff] }
 0x56e   :  { %v2285_v17 = vpop.eup %2284  ;;  %v1333_v24 = vmul.f32 %v2283_v25, %v2953_v11 }
 0x56f   :  { %v1330_v30 = vmul.f32 %v2285_v17, %v2930_v33 }
 0x570   :  { %v1342_v23 = vpack.c.bf16 %v1333_v24, %v1332_v36 }
 0x571   :  { %v1341_v4 = vpack.c.bf16 %v1331_v13, %v1330_v30  ;;  %v2287_v52 = vpop.eup %2286 }
 0x572   :  { %2098 = vmatmul.mubr.bf16.gmra.mrb[52].mxu0 %v1339_v19  ;;  %v2289_v62 = vpop.eup %2288  ;;  %v1335_v42 = vmul.f32 %v2287_v52, %v2957_v10 }
 0x573   :  { %2101 = vmatprep.mubr.bf16.mxu0 %v1340_v63  ;;  %v1334_v6 = vmul.f32 %v2289_v62, %v2948_v45 }
 0x575   :  { %v1343_v32 = vpack.c.bf16 %v1335_v42, %v1334_v6 }
 0x57a   :  { %2102 = vmatmul.mubr.bf16.gmra.mrb[56].mxu0 %v1341_v4 }
 0x57b   :  { %2105 = vmatprep.mubr.bf16.mxu0 %v1342_v23 }
 0x582   :  { %2106 = vmatmul.mubr.bf16.gmra.mrb[60].mxu0 %v1343_v32 }
 0x5ff   :  { %v2031_v11 = vpop.f32.mrb[32].mxu0 }
 0x600   :  { %v968_v33 = vadd.f32 %v2031_v11, %v822_v54  ;;  %v903_v7 = vpop.f32.mrb[33].mxu0 }
 0x601   :  { %v966_v46 = vadd.f32 %v903_v7, %v820_v26  ;;  %v2032_v16 = vpop.f32.mrb[34].mxu0 }
 0x602   :  { %984 = vst.msk [vmem:[#allocation2 + $0x10] sm:$0xff] %vm127_vm0, %v968_v33  ;;  %v969_v31 = vadd.f32 %v2032_v16, %v823_v49  ;;  %v906_v10 = vpop.f32.mrb[35].mxu0 }
 0x603   :  { %982 = vst.msk [vmem:[#allocation2] sm:$0xff] %vm127_vm0, %v966_v46  ;;  %v967_v45 = vadd.f32 %v906_v10, %v821_v35 }
 0x604   :  { %985 = vst.msk [vmem:[#allocation2 + $0x18] sm:$0xff] %vm127_vm0, %v969_v31 }
 0x605   :  { %983 = vst.msk [vmem:[#allocation2 + $0x8] sm:$0xff] %vm127_vm0, %v967_v45 }
 0x607   :  { %v2035_v21 = vpop.f32.mrb[36].mxu0 }
 0x608   :  { %v972_v44 = vadd.f32 %v2035_v21, %v826_v18  ;;  %v919_v56 = vpop.f32.mrb[37].mxu0 }
 0x609   :  { %v970_v2 = vadd.f32 %v919_v56, %v824_v59  ;;  %v2036_v60 = vpop.f32.mrb[38].mxu0 }
 0x60a   :  { %988 = vst.msk [vmem:[#allocation2 + $0x30] sm:$0xff] %vm127_vm0, %v972_v44  ;;  %v973_v51 = vadd.f32 %v2036_v60, %v827_v8  ;;  %v922_v53 = vpop.f32.mrb[39].mxu0 }
 0x60b   :  { %986 = vst.msk [vmem:[#allocation2 + $0x20] sm:$0xff] %vm127_vm0, %v970_v2  ;;  %v971_v41 = vadd.f32 %v922_v53, %v825_v38 }
 0x60c   :  { %989 = vst.msk [vmem:[#allocation2 + $0x38] sm:$0xff] %vm127_vm0, %v973_v51 }
 0x60d   :  { %987 = vst.msk [vmem:[#allocation2 + $0x28] sm:$0xff] %vm127_vm0, %v971_v41 }
 0x60f   :  { %v2039_v57 = vpop.f32.mrb[40].mxu0 }
 0x610   :  { %v976_v47 = vadd.f32 %v2039_v57, %v830_v50  ;;  %v935_v14 = vpop.f32.mrb[41].mxu0 }
 0x611   :  { %v974_v3 = vadd.f32 %v935_v14, %v828_v34  ;;  %v2040_v43 = vpop.f32.mrb[42].mxu0 }
 0x612   :  { %992 = vst.msk [vmem:[#allocation2 + $0x50] sm:$0xff] %vm127_vm0, %v976_v47  ;;  %v977_v55 = vadd.f32 %v2040_v43, %v831_v1  ;;  %v938_v20 = vpop.f32.mrb[43].mxu0 }
 0x613   :  { %990 = vst.msk [vmem:[#allocation2 + $0x40] sm:$0xff] %vm127_vm0, %v974_v3  ;;  %v975_v15 = vadd.f32 %v938_v20, %v829_v61 }
 0x614   :  { %993 = vst.msk [vmem:[#allocation2 + $0x58] sm:$0xff] %vm127_vm0, %v977_v55 }
 0x615   :  { %991 = vst.msk [vmem:[#allocation2 + $0x48] sm:$0xff] %vm127_vm0, %v975_v15 }
 0x617   :  { %v2043_v58 = vpop.f32.mrb[44].mxu0 }
 0x618   :  { %v980_v40 = vadd.f32 %v2043_v58, %v834_v37  ;;  %v951_v0 = vpop.f32.mrb[45].mxu0 }
 0x619   :  { %v978_v5 = vadd.f32 %v951_v0, %v832_v29  ;;  %v2044_v39 = vpop.f32.mrb[46].mxu0 }
 0x61a   :  { %996 = vst.msk [vmem:[#allocation2 + $0x70] sm:$0xff] %vm127_vm0, %v980_v40  ;;  %v981_v22 = vadd.f32 %v2044_v39, %v835_v12  ;;  %v954_v9 = vpop.f32.mrb[47].mxu0 }
 0x61b   :  { %994 = vst.msk [vmem:[#allocation2 + $0x60] sm:$0xff] %vm127_vm0, %v978_v5  ;;  %v979_v19 = vadd.f32 %v954_v9, %v833_v48 }
 0x61c   :  { %997 = vst.msk [vmem:[#allocation2 + $0x78] sm:$0xff] %vm127_vm0, %v981_v22 }
 0x61d   :  { %995 = vst.msk [vmem:[#allocation2 + $0x68] sm:$0xff] %vm127_vm0, %v979_v19 }
 0x63d   :  { %v2095_v28 = vpop.f32.mrb[48].mxu0 }
 0x63e   :  { %v1467_v63 = vadd.f32 3.0, %v2095_v28  ;;  %v1402_v25 = vpop.f32.mrb[49].mxu0 }
 0x63f   :  { %v1465_v17 = vadd.f32 3.0, %v1402_v25  ;;  %v2096_v13 = vpop.f32.mrb[50].mxu0 }
 0x640   :  { %v1483_v36 = vmax.f32 %v1467_v63, 0.0  ;;  %v1468_v24 = vadd.f32 3.0, %v2096_v13  ;;  %v1405_v30 = vpop.f32.mrb[51].mxu0 }
 0x641   :  { %v1481_v4 = vmax.f32 %v1465_v17, 0.0  ;;  %v1466_v52 = vadd.f32 3.0, %v1405_v30 }
 0x642   :  { %v1499_v23 = vmin.f32 %v1483_v36, 6.0  ;;  %v1484_v62 = vmax.f32 %v1468_v24, 0.0 }
 0x643   :  { %v1497_v42 = vmin.f32 %v1481_v4, 6.0  ;;  %v1482_v6 = vmax.f32 %v1466_v52, 0.0 }
 0x644   :  { %v1515_v32 = vmul.f32 %v2095_v28, %v1499_v23  ;;  %v1500_v27 = vmin.f32 %v1484_v62, 6.0 }
 0x645   :  { %v1513_v54 = vmul.f32 %v1497_v42, %v1402_v25  ;;  %v1498_v26 = vmin.f32 %v1482_v6, 6.0  ;;  %v2099_v11 = vpop.f32.mrb[52].mxu0 }
 0x646   :  { %v1516_v49 = vmul.f32 %v2096_v13, %v1500_v27  ;;  %v1471_v33 = vadd.f32 3.0, %v2099_v11  ;;  %v1418_v7 = vpop.f32.mrb[53].mxu0  ;;  %v1531_v35 = vmul.f32 0.16666667, %v1515_v32 }
 0x647   :  { %v1514_v46 = vmul.f32 %v1498_v26, %v1405_v30  ;;  %v1469_v16 = vadd.f32 3.0, %v1418_v7  ;;  %v2100_v31 = vpop.f32.mrb[54].mxu0  ;;  %v1529_v21 = vmul.f32 0.16666667, %v1513_v54 }
 0x648   :  { %v1532_v10 = vmul.f32 0.16666667, %v1516_v49  ;;  %v1487_v45 = vmax.f32 %v1471_v33, 0.0  ;;  %v1472_v18 = vadd.f32 3.0, %v2100_v31  ;;  %v1421_v59 = vpop.f32.mrb[55].mxu0 }
 0x649   :  { %v1530_v8 = vmul.f32 0.16666667, %v1514_v46  ;;  %v1485_v44 = vmax.f32 %v1469_v16, 0.0  ;;  %v1470_v56 = vadd.f32 3.0, %v1421_v59 }
 0x64a   :  { %v1546_v38 = vpack.c.bf16 %v1532_v10, %v1531_v35  ;;  %v1503_v2 = vmin.f32 %v1487_v45, 6.0  ;;  %v1488_v60 = vmax.f32 %v1472_v18, 0.0 }
 0x64b   :  { %v1545_v51 = vpack.c.bf16 %v1530_v8, %v1529_v21  ;;  %v1501_v53 = vmin.f32 %v1485_v44, 6.0  ;;  %v1486_v41 = vmax.f32 %v1470_v56, 0.0 }
 0x64c   :  { %v1519_v50 = vmul.f32 %v2099_v11, %v1503_v2  ;;  %v1504_v34 = vmin.f32 %v1488_v60, 6.0 }
 0x64d   :  { %v1517_v57 = vmul.f32 %v1501_v53, %v1418_v7  ;;  %v1502_v1 = vmin.f32 %v1486_v41, 6.0  ;;  %v2103_v47 = vpop.f32.mrb[56].mxu0  ;;  %2111 = vmatprep.mubr.msk.bf16.mxu0 %vm844_vm2, %v1545_v51 }
 0x64e   :  { %v1520_v14 = vmul.f32 %v2100_v31, %v1504_v34  ;;  %v1475_v61 = vadd.f32 3.0, %v2103_v47  ;;  %v1434_v3 = vpop.f32.mrb[57].mxu0  ;;  %2112 = vmatmul.mubr.msk.bf16.vlgmr.msra.gmra.mrb[64].mxu0 %vm844_vm2, %v1546_v38  ;;  %v1535_v43 = vmul.f32 0.16666667, %v1519_v50  ;;  %v1555_v50 = vld [vmem:[#allocation2 + $0x10] sm:$0xff] }
 0x64f   :  { %v1518_v55 = vmul.f32 %v1502_v1, %v1421_v59  ;;  %v1473_v20 = vadd.f32 3.0, %v1434_v3  ;;  %v2104_v15 = vpop.f32.mrb[58].mxu0  ;;  %v1533_v40 = vmul.f32 0.16666667, %v1517_v57  ;;  %v1553_v1 = vld [vmem:[#allocation2] sm:$0xff] }
 0x650   :  { %v1536_v37 = vmul.f32 0.16666667, %v1520_v14  ;;  %v1491_v29 = vmax.f32 %v1475_v61, 0.0  ;;  %v1476_v58 = vadd.f32 3.0, %v2104_v15  ;;  %v1437_v12 = vpop.f32.mrb[59].mxu0  ;;  %v1556_v61 = vld [vmem:[#allocation2 + $0x18] sm:$0xff] }
 0x651   :  { %v1534_v0 = vmul.f32 0.16666667, %v1518_v55  ;;  %v1489_v48 = vmax.f32 %v1473_v20, 0.0  ;;  %v1474_v5 = vadd.f32 3.0, %v1437_v12  ;;  %v1554_v55 = vld [vmem:[#allocation2 + $0x8] sm:$0xff] }
 0x652   :  { %v1548_v39 = vpack.c.bf16 %v1536_v37, %v1535_v43  ;;  %v1507_v22 = vmin.f32 %v1491_v29, 6.0  ;;  %v1492_v9 = vmax.f32 %v1476_v58, 0.0  ;;  %v3078_v37 = vld [vmem:[%s3144_s5] ss:$0 sm:$0xff]  ;;  %v1559_v29 = vld [vmem:[#allocation2 + $0x30] sm:$0xff]  ;;  %s2422_s5 = smov [#allocation11]  }
 0x653   :  { %v1547_v19 = vpack.c.bf16 %v1534_v0, %v1533_v40  ;;  %v1505_v28 = vmin.f32 %v1489_v48, 6.0  ;;  %v1490_v63 = vmax.f32 %v1474_v5, 0.0  ;;  %v1557_v40 = vld [vmem:[#allocation2 + $0x20] sm:$0xff]  ;;  %s1791_s30 = sshll.u32 %s2422_s5, 4  ;;  %s1792_s30 = int_to_ptr.vmem [resolvable:$true] %s1791_s30 }
 0x654   :  { %v1523_v25 = vmul.f32 %v2103_v47, %v1507_v22  ;;  %v1508_v17 = vmin.f32 %v1492_v9, 6.0  ;;  %s2378_s9 = scalar_lea.vmem %s1792_s30, 2048  ;;  %p2383_p5 = scmp.lt.s32.totalorder %s1792_s30, %s1792_s30 }
 0x655   :  { %v1521_v13 = vmul.f32 %v1505_v28, %v1434_v3  ;;  %v1506_v36 = vmin.f32 %v1490_v63, 6.0  ;;  %v2107_v24 = vpop.f32.mrb[60].mxu0  ;;  %2115 = vmatprep.mubr.msk.bf16.mxu0 %vm844_vm2, %v1547_v19  ;;  %v1558_v63 = vld [vmem:[#allocation2 + $0x28] sm:$0xff]  ;;  %p2379_p4 = scmp.ne.s32.totalorder %s1792_s30, %s2378_s9  ;;  %p2384_p6 = scmp.lt.s32.totalorder %s2378_s9, %s2378_s9 }
 0x656   :  { %v1524_v30 = vmul.f32 %v2104_v15, %v1508_v17  ;;  %v1479_v4 = vadd.f32 3.0, %v2107_v24  ;;  %v1450_v52 = vpop.f32.mrb[61].mxu0  ;;  %2116 = vmatmul.mubr.msk.bf16.gmra.mrb[68].mxu0 %vm844_vm2, %v1548_v39  ;;  %v1539_v23 = vmul.f32 0.16666667, %v1523_v25  ;;  %v1560_v39 = vld [vmem:[#allocation2 + $0x38] sm:$0xff] }
 0x657   :  { %v1522_v62 = vmul.f32 %v1506_v36, %v1437_v12  ;;  %v1477_v42 = vadd.f32 3.0, %v1450_v52  ;;  %v2108_v6 = vpop.f32.mrb[62].mxu0  ;;  %v1537_v11 = vmul.f32 0.16666667, %v1521_v13  ;;  %p2385_p7 = por %p2384_p6, %p2383_p5 }
 0x658   :  { %v1540_v32 = vmul.f32 0.16666667, %v1524_v30  ;;  %v1495_v27 = vmax.f32 %v1479_v4, 0.0  ;;  %v1480_v54 = vadd.f32 3.0, %v2108_v6  ;;  %v1453_v26 = vpop.f32.mrb[63].mxu0 }
 0x659   :  { %v1538_v49 = vmul.f32 0.16666667, %v1522_v62  ;;  %v1493_v33 = vmax.f32 %v1477_v42, 0.0  ;;  %v1478_v7 = vadd.f32 3.0, %v1453_v26  ;;  %v1561_v42 = vld [vmem:[#allocation2 + $0x40] sm:$0xff]  ;;  %p2386_p8 = pnand %p2385_p7, %p2379_p4 }
 0x65a   :  { %v1550_v35 = vpack.c.bf16 %v1540_v32, %v1539_v23  ;;  %v1511_v46 = vmin.f32 %v1495_v27, 6.0  ;;  %v1496_v16 = vmax.f32 %v1480_v54, 0.0  ;;  %v1564_v54 = vld [vmem:[#allocation2 + $0x58] sm:$0xff] }
 0x65b   :  { %v1549_v31 = vpack.c.bf16 %v1538_v49, %v1537_v11  ;;  %v1509_v10 = vmin.f32 %v1493_v33, 6.0  ;;  %v1494_v45 = vmax.f32 %v1478_v7, 0.0  ;;  %v1562_v7 = vld [vmem:[#allocation2 + $0x48] sm:$0xff] }
 0x65c   :  { %v1527_v18 = vmul.f32 %v2107_v24, %v1511_v46  ;;  %v1512_v59 = vmin.f32 %v1496_v16, 6.0 }
 0x65d   :  { %v1525_v21 = vmul.f32 %v1509_v10, %v1450_v52  ;;  %v1510_v8 = vmin.f32 %v1494_v45, 6.0  ;;  %2119 = vmatprep.mubr.msk.bf16.mxu0 %vm844_vm2, %v1549_v31  ;;  %v1563_v52 = vld [vmem:[#allocation2 + $0x50] sm:$0xff] }
 0x65e   :  { %v1528_v44 = vmul.f32 %v2108_v6, %v1512_v59  ;;  %2120 = vmatmul.mubr.msk.bf16.gmra.mrb[72].mxu0 %vm844_vm2, %v1550_v35  ;;  %v1543_v38 = vmul.f32 0.16666667, %v1527_v18  ;;  %v1567_v59 = vld [vmem:[#allocation2 + $0x70] sm:$0xff] }
 0x65f   :  { %v1526_v56 = vmul.f32 %v1510_v8, %v1453_v26  ;;  %v1541_v60 = vmul.f32 0.16666667, %v1525_v21 }
 0x660   :  { %v1544_v2 = vmul.f32 0.16666667, %v1528_v44  ;;  %v1565_v44 = vld [vmem:[#allocation2 + $0x60] sm:$0xff] }
 0x661   :  { %v1542_v51 = vmul.f32 0.16666667, %v1526_v56 }
 0x662   :  { %v1552_v53 = vpack.c.bf16 %v1544_v2, %v1543_v38 }
 0x663   :  { %v1551_v41 = vpack.c.bf16 %v1542_v51, %v1541_v60  ;;  %v1568_v60 = vld [vmem:[#allocation2 + $0x78] sm:$0xff] }
 0x665   :  { %2123 = vmatprep.mubr.msk.bf16.mxu0 %vm844_vm2, %v1551_v41 }
 0x666   :  { %2124 = vmatmul.mubr.msk.bf16.gmra.mrb[76].mxu0 %vm844_vm2, %v1552_v53 }
 0x721   :  { %v2113_v34 = vpop.f32.mrb[64].mxu0 }
 0x722   :  { %v1701_v57 = vadd.f32 %v2113_v34, %v1555_v50  ;;  %v1636_v47 = vpop.f32.mrb[65].mxu0  ;;  %v1566_v34 = vld [vmem:[#allocation2 + $0x68] sm:$0xff] }
 0x723   :  { %v1699_v14 = vadd.f32 %v1636_v47, %v1553_v1  ;;  %v2114_v3 = vpop.f32.mrb[66].mxu0 }
 0x724   :  { %1717 = vst.msk [vmem:[#allocation2 + $0x10] sm:$0xff] %vm127_vm0, %v1701_v57  ;;  %v1702_v43 = vadd.f32 %v2114_v3, %v1556_v61  ;;  %v1639_v20 = vpop.f32.mrb[67].mxu0 }
 0x725   :  { %1715 = vst.msk [vmem:[#allocation2] sm:$0xff] %vm127_vm0, %v1699_v14  ;;  %v1700_v15 = vadd.f32 %v1639_v20, %v1554_v55 }
 0x726   :  { %1718 = vst.msk [vmem:[#allocation2 + $0x18] sm:$0xff] %vm127_vm0, %v1702_v43 }
 0x727   :  { %1716 = vst.msk [vmem:[#allocation2 + $0x8] sm:$0xff] %vm127_vm0, %v1700_v15 }
 0x729   :  { %v2117_v58 = vpop.f32.mrb[68].mxu0 }
 0x72a   :  { %v1705_v12 = vadd.f32 %v2117_v58, %v1559_v29  ;;  %v1652_v0 = vpop.f32.mrb[69].mxu0 }
 0x72b   :  { %v1733_v48 = vld [vmem:[#allocation2 + $0x10] sm:$0xff]  ;;  %v1703_v5 = vadd.f32 %v1652_v0, %v1557_v40  ;;  %v2118_v22 = vpop.f32.mrb[70].mxu0 }
 0x72c   :  { %v1756_v9 = vadd.f32 %v3078_v37, %v1733_v48  ;;  %v1731_v19 = vld [vmem:[#allocation2] sm:$0xff]  ;;  %1721 = vst.msk [vmem:[#allocation2 + $0x30] sm:$0xff] %vm127_vm0, %v1705_v12  ;;  %v1706_v28 = vadd.f32 %v2118_v22, %v1560_v39  ;;  %v1655_v25 = vpop.f32.mrb[71].mxu0 }
 0x72d   :  { %v1754_v17 = vadd.f32 %v3078_v37, %v1731_v19  ;;  %v1734_v13 = vld [vmem:[#allocation2 + $0x18] sm:$0xff]  ;;  %1719 = vst.msk [vmem:[#allocation2 + $0x20] sm:$0xff] %vm127_vm0, %v1703_v5  ;;  %v1704_v36 = vadd.f32 %v1655_v25, %v1558_v63 }
 0x72e   :  { %1772 = vst.msk [vmem:[#allocation11 + $0x10] sm:$0xff] %vm127_vm0, %v1756_v9  ;;  %v1757_v24 = vadd.f32 %v3078_v37, %v1734_v13  ;;  %v1732_v30 = vld [vmem:[#allocation2 + $0x8] sm:$0xff]  ;;  %1722 = vst.msk [vmem:[#allocation2 + $0x38] sm:$0xff] %vm127_vm0, %v1706_v28 }
 0x72f   :  { %1770 = vst.msk [vmem:[#allocation11] sm:$0xff] %vm127_vm0, %v1754_v17  ;;  %v1755_v4 = vadd.f32 %v3078_v37, %v1732_v30  ;;  %1720 = vst.msk [vmem:[#allocation2 + $0x28] sm:$0xff] %vm127_vm0, %v1704_v36 }
 0x730   :  { %1773 = vst.msk [vmem:[#allocation11 + $0x18] sm:$0xff] %vm127_vm0, %v1757_v24 }
 0x731   :  { %1771 = vst.msk [vmem:[#allocation11 + $0x8] sm:$0xff] %vm127_vm0, %v1755_v4  ;;  %v2121_v23 = vpop.f32.mrb[72].mxu0 }
 0x732   :  { %v1709_v62 = vadd.f32 %v2121_v23, %v1563_v52  ;;  %v1668_v6 = vpop.f32.mrb[73].mxu0 }
 0x733   :  { %v1737_v32 = vld [vmem:[#allocation2 + $0x30] sm:$0xff]  ;;  %v1707_v27 = vadd.f32 %v1668_v6, %v1561_v42  ;;  %v2122_v26 = vpop.f32.mrb[74].mxu0 }
 0x734   :  { %v1760_v11 = vadd.f32 %v3078_v37, %v1737_v32  ;;  %v1735_v49 = vld [vmem:[#allocation2 + $0x20] sm:$0xff]  ;;  %1725 = vst.msk [vmem:[#allocation2 + $0x50] sm:$0xff] %vm127_vm0, %v1709_v62  ;;  %v1710_v33 = vadd.f32 %v2122_v26, %v1564_v54  ;;  %v1671_v35 = vpop.f32.mrb[75].mxu0 }
 0x735   :  { %v1758_v46 = vadd.f32 %v3078_v37, %v1735_v49  ;;  %v1738_v16 = vld [vmem:[#allocation2 + $0x38] sm:$0xff]  ;;  %1723 = vst.msk [vmem:[#allocation2 + $0x40] sm:$0xff] %vm127_vm0, %v1707_v27  ;;  %v1708_v31 = vadd.f32 %v1671_v35, %v1562_v7 }
 0x736   :  { %1776 = vst.msk [vmem:[#allocation11 + $0x30] sm:$0xff] %vm127_vm0, %v1760_v11  ;;  %v1761_v10 = vadd.f32 %v3078_v37, %v1738_v16  ;;  %v1736_v45 = vld [vmem:[#allocation2 + $0x28] sm:$0xff]  ;;  %1726 = vst.msk [vmem:[#allocation2 + $0x58] sm:$0xff] %vm127_vm0, %v1710_v33 }
 0x737   :  { %1774 = vst.msk [vmem:[#allocation11 + $0x20] sm:$0xff] %vm127_vm0, %v1758_v46  ;;  %v1759_v18 = vadd.f32 %v3078_v37, %v1736_v45  ;;  %1724 = vst.msk [vmem:[#allocation2 + $0x48] sm:$0xff] %vm127_vm0, %v1708_v31 }
 0x738   :  { %1777 = vst.msk [vmem:[#allocation11 + $0x38] sm:$0xff] %vm127_vm0, %v1761_v10 }
 0x739   :  { %1775 = vst.msk [vmem:[#allocation11 + $0x28] sm:$0xff] %vm127_vm0, %v1759_v18  ;;  %v2125_v21 = vpop.f32.mrb[76].mxu0 }
 0x73a   :  { %v1713_v8 = vadd.f32 %v2125_v21, %v1567_v59  ;;  %v1684_v56 = vpop.f32.mrb[77].mxu0 }
 0x73b   :  { %v1741_v38 = vld [vmem:[#allocation2 + $0x50] sm:$0xff]  ;;  %v1711_v2 = vadd.f32 %v1684_v56, %v1565_v44  ;;  %v2126_v51 = vpop.f32.mrb[78].mxu0 }
 0x73c   :  { %v1764_v53 = vadd.f32 %v3078_v37, %v1741_v38  ;;  %v1739_v41 = vld [vmem:[#allocation2 + $0x40] sm:$0xff]  ;;  %1729 = vst.msk [vmem:[#allocation2 + $0x70] sm:$0xff] %vm127_vm0, %v1713_v8  ;;  %v1714_v50 = vadd.f32 %v2126_v51, %v1568_v60  ;;  %v1687_v57 = vpop.f32.mrb[79].mxu0 }
 0x73d   :  { %v1762_v1 = vadd.f32 %v3078_v37, %v1739_v41  ;;  %v1742_v47 = vld [vmem:[#allocation2 + $0x58] sm:$0xff]  ;;  %1727 = vst.msk [vmem:[#allocation2 + $0x60] sm:$0xff] %vm127_vm0, %v1711_v2  ;;  %v1712_v14 = vadd.f32 %v1687_v57, %v1566_v34 }
 0x73e   :  { %1780 = vst.msk [vmem:[#allocation11 + $0x50] sm:$0xff] %vm127_vm0, %v1764_v53  ;;  %v1765_v61 = vadd.f32 %v3078_v37, %v1742_v47  ;;  %v1740_v3 = vld [vmem:[#allocation2 + $0x48] sm:$0xff]  ;;  %1730 = vst.msk [vmem:[#allocation2 + $0x78] sm:$0xff] %vm127_vm0, %v1714_v50 }
 0x73f   :  { %1778 = vst.msk [vmem:[#allocation11 + $0x40] sm:$0xff] %vm127_vm0, %v1762_v1  ;;  %v1763_v43 = vadd.f32 %v3078_v37, %v1740_v3  ;;  %1728 = vst.msk [vmem:[#allocation2 + $0x68] sm:$0xff] %vm127_vm0, %v1712_v14 }
 0x740   :  { %1781 = vst.msk [vmem:[#allocation11 + $0x58] sm:$0xff] %vm127_vm0, %v1765_v61 }
 0x741   :  { %1779 = vst.msk [vmem:[#allocation11 + $0x48] sm:$0xff] %vm127_vm0, %v1763_v43 }
 0x743   :  { %v1745_v55 = vld [vmem:[#allocation2 + $0x70] sm:$0xff] }
 0x744   :  { %v1768_v20 = vadd.f32 %v3078_v37, %v1745_v55  ;;  %v1743_v15 = vld [vmem:[#allocation2 + $0x60] sm:$0xff] }
 0x745   :  { %v1766_v29 = vadd.f32 %v3078_v37, %v1743_v15  ;;  %v1746_v58 = vld [vmem:[#allocation2 + $0x78] sm:$0xff] }
 0x746   :  { %1784 = vst.msk [vmem:[#allocation11 + $0x70] sm:$0xff] %vm127_vm0, %v1768_v20  ;;  %v1769_v12 = vadd.f32 %v3078_v37, %v1746_v58  ;;  %v1744_v40 = vld [vmem:[#allocation2 + $0x68] sm:$0xff] }
 0x747   :  { %1782 = vst.msk [vmem:[#allocation11 + $0x60] sm:$0xff] %vm127_vm0, %v1766_v29  ;;  %v1767_v0 = vadd.f32 %v3078_v37, %v1744_v40 }
 0x748   :  { %1785 = vst.msk [vmem:[#allocation11 + $0x78] sm:$0xff] %vm127_vm0, %v1769_v12 }
 0x749   :  { %1783 = vst.msk [vmem:[#allocation11 + $0x68] sm:$0xff] %vm127_vm0, %v1767_v0 }
 0x74a   :  { %2389 = shalt.err (!%p2386_p8)
}
 0x74b   :  { %s2390_s13 = scalar_lea.hbm %s3145_s6, 2048 }
 0x74c   :  { %p2391_p9 = scmp.ne.s32.totalorder %s3145_s6, %s2390_s13  ;;  %p2394_p10 = scmp.lt.u32.totalorder %s2390_s13, %s3145_s6 }
 0x74e   :  { %p2396_p11 = pnand %p2394_p10, %p2391_p9 }
 0x750   :  { %2399 = shalt.err (!%p2396_p11)
}
 0x751   :  { %1797 = dma.vmem_to_hbm [thread:$0]  %s1792_s30, 2048, %s3145_s6, [#allocation5], %s2412_s1, %s2412_s1, %s2413_s21  }
 0x752   :  { %2406 = dma.done.wait [#allocation5], 2048  }
 0x753   :  { %2407 = vsyncadd [#allocation5], 4294965248 }
 0x754   :  { %1801 = vsyncpa [#allocation4], 1 }
 0x755   :  { %1802 = vsyncpa [#allocation7], 1 }
 0x756   :  { %1803 = vsyncpa [#allocation10], 1 }
 0x757   :  { %1804 = vsyncpa [#allocation5], 1 }

</bundles_post_ra>
